<compile_context>
chip_gen: v7x
topology: tpu7x:2x2x1
jax: 0.10.0
libtpu: 0.0.40
codegen_flags: <defaults>
</compile_context>

<pallas_src>
import jax
import jax.numpy as jnp
from jax.experimental import pallas as pl
from jax.experimental.pallas import tpu as pltpu


# ----------------------------------------------------------------------------------
# Pass 1: fused QKV(+prior, +scale) conv, group softmax, SE block, pooled stats
# ----------------------------------------------------------------------------------
def _build_main_kernel(C, heads, N, TN, padded):
    C2 = C // 2
    g = C // heads            # softmax group size per head
    H2 = heads // 2           # heads per half (8-sublane aligned slabs for heads=16)
    SUP1 = 3 * C              # rows [SUP1, SUP1+6) of qkv = sup_q1
    SUP2 = 3 * C + 8          # row SUP2 of qkv = sup_q2 (8-aligned start)
    BIG = 3.0e38

    def kernel(x_ref, wqkv_ref, bqkv_ref, sew1_ref, seb1_ref, sew2_ref, seb2_ref,
               os1_ref, os2_ref, sq1_ref, sq2_ref, pooled_ref):
        nt = pl.program_id(1)

        xb = x_ref[0]                                                       # (C, TN) bf16
        # fused [scale*Q ; K ; V ; prior1 ; prior2] 1x1x1 convs, bf16 MXU / f32 acc
        qkv = (jnp.dot(wqkv_ref[...], xb, preferred_element_type=jnp.float32)
               + bqkv_ref[...])                                             # (3C+16, TN)

        sq1_ref[0] = qkv[SUP1:SUP1 + 6]
        sq2_ref[0] = qkv[SUP2:SUP2 + 1]

        if padded:
            lane = jax.lax.broadcasted_iota(jnp.int32, (C, TN), 1)
            valid = (nt * TN + lane) < N
        else:
            valid = None

        def branch(half, row0, os_ref):
            q0, k0, v0 = row0, C + row0, 2 * C + row0

            # group softmax over the g channels of each head (j-major H2-row slabs)
            e_parts = [qkv[q0 + j * H2:q0 + (j + 1) * H2]
                       * qkv[k0 + j * H2:k0 + (j + 1) * H2]
                       for j in range(g)]                       # scale folded into Q
            m = e_parts[0]
            for j in range(1, g):
                m = jnp.maximum(m, e_parts[j])
            p_parts = [jnp.exp(ep - m) for ep in e_parts]
            s = p_parts[0]
            for j in range(1, g):
                s = s + p_parts[j]
            inv_s = pl.reciprocal(s, approx=True)

            # attention output in j-major layout, SE layer-1 as ONE (mid,C2)x(C2,TN)
            o_cat = jnp.concatenate(
                [p_parts[j] * inv_s * qkv[v0 + j * H2:v0 + (j + 1) * H2]
                 for j in range(g)], axis=0).astype(jnp.bfloat16)           # (C2, TN)
            hmid = jnp.maximum(
                jnp.dot(sew1_ref[half], o_cat, preferred_element_type=jnp.float32)
                + seb1_ref[half], 0.0)                                      # (mid, TN)
            z = (jnp.dot(sew2_ref[half], hmid.astype(jnp.bfloat16),
                         preferred_element_type=jnp.float32)
                 + seb2_ref[half])                                          # (C, TN)
            # sigmoid = 0.5*(tanh(z/2)+1); tanh in bf16 (o_s is stored bf16 anyway)
            t = jnp.tanh((0.5 * z).astype(jnp.bfloat16)).astype(jnp.float32)
            o_s = 0.5 * (t + 1.0)                                           # (C, TN) f32
            os_ref[0] = o_s.astype(os_ref.dtype)                            # bf16 store

            # per-tile pooled partials (masked against the N overhang)
            if valid is not None:
                mx = jnp.max(jnp.where(valid, o_s, -BIG), axis=1, keepdims=True)
                sm = jnp.sum(jnp.where(valid, o_s, 0.0), axis=1, keepdims=True)
                mn = jnp.min(jnp.where(valid, o_s, BIG), axis=1, keepdims=True)
            else:
                mx = jnp.max(o_s, axis=1, keepdims=True)
                sm = jnp.sum(o_s, axis=1, keepdims=True)
                mn = jnp.min(o_s, axis=1, keepdims=True)
            return mx, sm, mn

        mx1, sm1, mn1 = branch(0, 0, os1_ref)
        mx2, sm2, mn2 = branch(1, C2, os2_ref)

        zero = jnp.zeros_like(mx1)
        new = jnp.concatenate([mx1, sm1, mn1, mx2, sm2, mn2, zero, zero], axis=1)

        @pl.when(nt == 0)
        def _first():
            pooled_ref[0] = new            # first tile initializes the accumulator

        @pl.when(nt != 0)
        def _rest():
            old = pooled_ref[0]
            col = jax.lax.broadcasted_iota(jnp.int32, (C, 8), 1)
            is_max = (col == 0) | (col == 3)
            is_min = (col == 2) | (col == 5)
            pooled_ref[0] = jnp.where(
                is_max, jnp.maximum(old, new),
                jnp.where(is_min, jnp.minimum(old, new), old + new))

    return kernel


# ----------------------------------------------------------------------------------
# Gate micro-kernel (grid=(bs,)): squeeze conv + FC gate from pooled stats
# ----------------------------------------------------------------------------------
def _build_gate_kernel(N):
    inv_n = 1.0 / float(N)

    def kernel(pooled_ref, sqz_ref, fw1_ref, fb1_ref, fw2_ref, fb2_ref, gate_ref):
        pooled = pooled_ref[0]                                    # (C, 8)

        def gate(half, col0):
            mx = pooled[:, col0:col0 + 1]
            av = pooled[:, col0 + 1:col0 + 2] * inv_n
            mn = pooled[:, col0 + 2:col0 + 3]
            stats = jnp.concatenate([mx, av, mn, jnp.ones_like(mx)], axis=1)   # (C, 4)
            s1 = jnp.sum(stats * sqz_ref[half], axis=1, keepdims=True)         # (C, 1)
            h1 = jnp.maximum(
                jnp.dot(fw1_ref[half], s1, preferred_element_type=jnp.float32)
                + fb1_ref[half], 0.0)                                           # (mid, 1)
            zg = (jnp.dot(fw2_ref[half], h1, preferred_element_type=jnp.float32)
                  + fb2_ref[half])                                              # (C, 1)
            return 0.5 * (jnp.tanh(0.5 * zg) + 1.0)

        gate_ref[0] = jnp.concatenate([gate(0, 0), gate(1, 3)], axis=1)         # (C, 2)

    return kernel


# ----------------------------------------------------------------------------------
# Pass 2: broadcast-multiply the precomputed gates onto the bf16 o_s tiles
# ----------------------------------------------------------------------------------
def _apply_gate_kernel(gate_ref, os1_ref, os2_ref, out1_ref, out2_ref):
    gate = gate_ref[0]                                            # (C, 2)
    out1_ref[0] = gate[:, 0:1] * os1_ref[0].astype(jnp.float32)
    out2_ref[0] = gate[:, 1:2] * os2_ref[0].astype(jnp.float32)


# ----------------------------------------------------------------------------------
# Parameter handling
# ----------------------------------------------------------------------------------
def init_params(key, C, heads):
    C2 = C // 2
    mid = C // (C // 16)
    names_shapes = [
        ('Wq', (C, C)), ('bq', (C,)),
        ('Wk', (C, C)), ('bk', (C,)),
        ('Wv', (C, C)), ('bv', (C,)),
        ('Wp1', (6, C2)), ('bp1', (6,)),
        ('Wp2', (1, C2)), ('bp2', (1,)),
        ('se1_W1', (mid, C2)), ('se1_b1', (mid,)),
        ('se1_W2', (C, mid)), ('se1_b2', (C,)),
        ('se2_W1', (mid, C2)), ('se2_b1', (mid,)),
        ('se2_W2', (C, mid)), ('se2_b2', (C,)),
        ('wsq1', (1, 3)), ('bsq1', (1,)),
        ('wsq2', (1, 3)), ('bsq2', (1,)),
        ('fc1_W1', (mid, C)), ('fc1_b1', (mid,)),
        ('fc1_W2', (C, mid)), ('fc1_b2', (C,)),
        ('fc2_W1', (mid, C)), ('fc2_b1', (mid,)),
        ('fc2_W2', (C, mid)), ('fc2_b2', (C,)),
    ]
    keys = jax.random.split(key, len(names_shapes))
    p = {}
    for (name, shape), kk in zip(names_shapes, keys):
        if len(shape) == 1:
            p[name] = jax.random.normal(kk, shape, jnp.float32) * 0.05
        else:
            p[name] = jax.random.normal(kk, shape, jnp.float32) * (float(shape[1]) ** -0.5)
    return p


def pack_kernel_params(p, C, heads):
    """Permute/fold weights: j-major halves, scale folded into Q, priors folded into
    the fused QKV matmul, big matmul weights cast to bf16."""
    C2 = C // 2
    g = C // heads
    H2 = heads // 2
    scale = float(g) ** (-0.5)
    hp = jax.lax.Precision.HIGHEST
    perm_half = jnp.array([(r % H2) * g + (r // H2) for r in range(C2)], dtype=jnp.int32)
    perm_full = jnp.concatenate([perm_half, perm_half + C2])
    col = lambda v: v[:, None]

    Wq_p = p['Wq'][perm_full] * scale          # softmax scale folded into Q
    bq_p = p['bq'][perm_full] * scale
    Wk_p = p['Wk'][perm_full]
    bk_p = p['bk'][perm_full]
    Wv_p = p['Wv'][perm_full]
    bv_p = p['bv'][perm_full]

    # fold the prior convs into the fused QKV matmul (original-order, unscaled Wq)
    Wp1f = jnp.einsum('oc,ci->oi', p['Wp1'], p['Wq'][:C2], precision=hp)
    bp1f = jnp.einsum('oc,c->o', p['Wp1'], p['bq'][:C2], precision=hp) + p['bp1']
    Wp2f = jnp.einsum('oc,ci->oi', p['Wp2'], p['Wq'][C2:], precision=hp)
    bp2f = jnp.einsum('oc,c->o', p['Wp2'], p['bq'][C2:], precision=hp) + p['bp2']

    zW2 = jnp.zeros((2, C), jnp.float32)
    zW7 = jnp.zeros((7, C), jnp.float32)
    zb2 = jnp.zeros((2,), jnp.float32)
    zb7 = jnp.zeros((7,), jnp.float32)

    Wqkv = jnp.concatenate([Wq_p, Wk_p, Wv_p, Wp1f, zW2, Wp2f, zW7], axis=0)  # (3C+16, C)
    bqkv = col(jnp.concatenate([bq_p, bk_p, bv_p, bp1f, zb2, bp2f, zb7]))

    w1p = lambda W: W[:, perm_half]            # column-permute to the j-major row order

    return dict(
        Wqkv=Wqkv.astype(jnp.bfloat16), bqkv=bqkv,
        seW1=jnp.stack([w1p(p['se1_W1']), w1p(p['se2_W1'])]).astype(jnp.bfloat16),  # (2,mid,C2)
        seB1=jnp.stack([col(p['se1_b1']), col(p['se2_b1'])]),                        # (2,mid,1)
        seW2=jnp.stack([p['se1_W2'], p['se2_W2']]).astype(jnp.bfloat16),             # (2,C,mid)
        seB2=jnp.stack([col(p['se1_b2']), col(p['se2_b2'])]),                        # (2,C,1)
        sqz=jnp.stack([jnp.concatenate([p['wsq1'][0], p['bsq1']]),
                       jnp.concatenate([p['wsq2'][0], p['bsq2']])])[:, None, :],     # (2,1,4)
        fcW1=jnp.stack([p['fc1_W1'], p['fc2_W1']]),                                  # (2,mid,C)
        fcB1=jnp.stack([col(p['fc1_b1']), col(p['fc2_b1'])]),                        # (2,mid,1)
        fcW2=jnp.stack([p['fc1_W2'], p['fc2_W2']]),                                  # (2,C,mid)
        fcB2=jnp.stack([col(p['fc1_b2']), col(p['fc2_b2'])]),                        # (2,C,1)
    )


# ----------------------------------------------------------------------------------
# Wrapper
# ----------------------------------------------------------------------------------
def scaling_self_att3dot(x5, params, heads=16, tn_max=4096):
    bs, C, d, h, w = x5.shape
    assert C % heads == 0 and heads % 2 == 0
    N = d * h * w

    if N <= tn_max:
        TN, n_tiles = N, 1
    else:
        assert tn_max % 128 == 0, "tile width must be lane-aligned when tiling N"
        TN, n_tiles = tn_max, pl.cdiv(N, tn_max)
    padded = (N % TN) != 0          # last block overhangs; handled by masking/OOB drops

    x = x5.reshape(bs, C, N).astype(jnp.bfloat16)     # bf16 at the HBM boundary
    kp = pack_kernel_params(params, C, heads)

    tiled = lambda b, n: (b, 0, n)
    batch0 = lambda b, n: (b, 0, 0)

    def rep(arr):                    # replicated (untiled) operand
        nd = arr.ndim
        return pl.BlockSpec(arr.shape, lambda *ix, _nd=nd: (0,) * _nd)

    # Raised from the 32 MiB scoped default for TN sweeps; stays below v7x's
    # 64 MiB/core physical VMEM (v5e/v6e have 128 MiB and can go higher).
    vmem_limit = 48 * 1024 * 1024

    # ----- pass 1: QKV + softmax + SE + pooled stats ---------------------------
    main_kernel = _build_main_kernel(C, heads, N, TN, padded)
    os1, os2, sq1, sq2, pooled = pl.pallas_call(
        main_kernel,
        out_shape=(
            jax.ShapeDtypeStruct((bs, C, N), jnp.bfloat16),   # o_s1 (intermediate)
            jax.ShapeDtypeStruct((bs, C, N), jnp.bfloat16),   # o_s2 (intermediate)
            jax.ShapeDtypeStruct((bs, 6, N), jnp.float32),    # sup_q1
            jax.ShapeDtypeStruct((bs, 1, N), jnp.float32),    # sup_q2
            jax.ShapeDtypeStruct((bs, C, 8), jnp.float32),    # pooled max/sum/min stats
        ),
        grid_spec=pltpu.PrefetchScalarGridSpec(
            num_scalar_prefetch=0, grid=(bs, n_tiles),
            in_specs=[pl.BlockSpec((1, C, TN), tiled),
                      rep(kp['Wqkv']), rep(kp['bqkv']),
                      rep(kp['seW1']), rep(kp['seB1']),
                      rep(kp['seW2']), rep(kp['seB2'])],
            out_specs=[pl.BlockSpec((1, C, TN), tiled),
                       pl.BlockSpec((1, C, TN), tiled),
                       pl.BlockSpec((1, 6, TN), tiled),
                       pl.BlockSpec((1, 1, TN), tiled),
                       pl.BlockSpec((1, C, 8), batch0)]),     # resident accumulator over n
        compiler_params=pltpu.CompilerParams(
            dimension_semantics=("parallel", "arbitrary"),
            vmem_limit_bytes=vmem_limit),
    )(x, kp['Wqkv'], kp['bqkv'], kp['seW1'], kp['seB1'], kp['seW2'], kp['seB2'])

    # ----- gate micro-kernel: once per batch element ----------------------------
    gate_kernel = _build_gate_kernel(N)
    gates = pl.pallas_call(
        gate_kernel,
        out_shape=jax.ShapeDtypeStruct((bs, C, 2), jnp.float32),
        grid_spec=pltpu.PrefetchScalarGridSpec(
            num_scalar_prefetch=0, grid=(bs,),
            in_specs=[pl.BlockSpec((1, C, 8), lambda b: (b, 0, 0)),
                      rep(kp['sqz']), rep(kp['fcW1']), rep(kp['fcB1']),
                      rep(kp['fcW2']), rep(kp['fcB2'])],
            out_specs=pl.BlockSpec((1, C, 2), lambda b: (b, 0, 0))),
        compiler_params=pltpu.CompilerParams(
            dimension_semantics=("parallel",)),
    )(pooled, kp['sqz'], kp['fcW1'], kp['fcB1'], kp['fcW2'], kp['fcB2'])

    # ----- pass 2: apply precomputed gates (pure memory-bound multiply) ---------
    out1, out2 = pl.pallas_call(
        _apply_gate_kernel,
        out_shape=(jax.ShapeDtypeStruct((bs, C, N), jnp.float32),
                   jax.ShapeDtypeStruct((bs, C, N), jnp.float32)),
        grid_spec=pltpu.PrefetchScalarGridSpec(
            num_scalar_prefetch=0, grid=(bs, n_tiles),
            in_specs=[pl.BlockSpec((1, C, 2), batch0),
                      pl.BlockSpec((1, C, TN), tiled),
                      pl.BlockSpec((1, C, TN), tiled)],
            out_specs=[pl.BlockSpec((1, C, TN), tiled),
                       pl.BlockSpec((1, C, TN), tiled)]),
        compiler_params=pltpu.CompilerParams(
            dimension_semantics=("parallel", "parallel"),
            vmem_limit_bytes=vmem_limit),
    )(gates, os1, os2)

    out1 = out1.reshape(bs, C, d, h, w)
    out2 = out2.reshape(bs, C, d, h, w)
    sq1 = sq1.reshape(bs, 6, d, h, w)
    sq2 = sq2.reshape(bs, 1, d, h, w)
    return out1, out2, sq1, sq2


# ----------------------------------------------------------------------------------
# Pure-JAX reference (mirrors the PyTorch forward exactly, unpermuted f32 weights)
# ----------------------------------------------------------------------------------
def reference_forward(x5, p, heads):
    bs, C, d, h, w = x5.shape
    N = d * h * w
    C2 = C // 2
    g = C // heads
    H2 = heads // 2
    scale = (C // heads) ** (-0.5)
    hp = jax.lax.Precision.HIGHEST
    x = x5.reshape(bs, C, N)

    def conv(W, b, t):
        return jnp.einsum('oc,bcn->bon', W, t, precision=hp) + b[None, :, None]

    q = conv(p['Wq'], p['bq'], x)
    k = conv(p['Wk'], p['bk'], x)
    v = conv(p['Wv'], p['bv'], x)

    def half(qh, kh, vh, Wp, bp, seW1, seb1, seW2, seb2, wsq, bsq, fW1, fb1, fW2, fb2):
        sup = conv(Wp, bp, qh)
        e = (qh * kh * scale).reshape(bs, H2, g, N)
        m = jnp.max(e, axis=2, keepdims=True)
        pe = jnp.exp(e - m)
        attn = pe / jnp.sum(pe, axis=2, keepdims=True)
        o = (attn * vh.reshape(bs, H2, g, N)).reshape(bs, C2, N)
        o_s = jax.nn.sigmoid(conv(seW2, seb2, jax.nn.relu(conv(seW1, seb1, o))))
        pooled = jnp.stack(
            [jnp.max(o_s, axis=2), jnp.mean(o_s, axis=2), jnp.min(o_s, axis=2)], axis=2)
        s1 = jnp.einsum('bci,i->bc', pooled, wsq[0], precision=hp) + bsq[0]
        h1 = jax.nn.relu(jnp.einsum('bc,mc->bm', s1, fW1, precision=hp) + fb1)
        gate = jax.nn.sigmoid(jnp.einsum('bm,cm->bc', h1, fW2, precision=hp) + fb2)
        return gate[:, :, None] * o_s, sup

    out1, sup1 = half(q[:, :C2], k[:, :C2], v[:, :C2], p['Wp1'], p['bp1'],
                      p['se1_W1'], p['se1_b1'], p['se1_W2'], p['se1_b2'],
                      p['wsq1'], p['bsq1'], p['fc1_W1'], p['fc1_b1'],
                      p['fc1_W2'], p['fc1_b2'])
    out2, sup2 = half(q[:, C2:], k[:, C2:], v[:, C2:], p['Wp2'], p['bp2'],
                      p['se2_W1'], p['se2_b1'], p['se2_W2'], p['se2_b2'],
                      p['wsq2'], p['bsq2'], p['fc2_W1'], p['fc2_b1'],
                      p['fc2_W2'], p['fc2_b2'])
    return (out1.reshape(bs, C, d, h, w), out2.reshape(bs, C, d, h, w),
            sup1.reshape(bs, 6, d, h, w), sup2.reshape(bs, 1, d, h, w))


# ----------------------------------------------------------------------------------
if __name__ == "__main__":
    heads = 16
    C = 32
    key = jax.random.PRNGKey(0)
    kx1, kx2, kparam = jax.random.split(key, 3)
    params = init_params(kparam, C, heads)

    # bf16 x, bf16 matmul weights and bf16 o_s/tanh bound the achievable accuracy.
    tol = dict(rtol=2e-2, atol=2e-2)

    # Test 1: small volume, single N tile per batch element.
    bs, d, h, w = 2, 4, 4, 4
    x1 = jax.random.normal(kx1, (bs, C, d, h, w), jnp.float32)
    outs1 = jax.block_until_ready(scaling_self_att3dot(x1, params, heads=heads))
    refs1 = reference_forward(x1.astype(jnp.bfloat16).astype(jnp.float32), params, heads)
    shapes1 = [(bs, C, d, h, w), (bs, C, d, h, w), (bs, 6, d, h, w), (bs, 1, d, h, w)]
    for o, r, es in zip(outs1, refs1, shapes1):
        assert o.shape == es, (o.shape, es)
        assert bool(jnp.allclose(o, r, **tol)), float(jnp.max(jnp.abs(o - r)))

    # Test 2: N-tiled + masked-pooling path (N=320, TN=128 -> 3 tiles, last overhangs).
    bs2, d2, h2, w2 = 1, 4, 8, 10
    x2 = jax.random.normal(kx2, (bs2, C, d2, h2, w2), jnp.float32)
    outs2 = jax.block_until_ready(
        scaling_self_att3dot(x2, params, heads=heads, tn_max=128))
    refs2 = reference_forward(x2.astype(jnp.bfloat16).astype(jnp.float32), params, heads)
    shapes2 = [(bs2, C, d2, h2, w2), (bs2, C, d2, h2, w2),
               (bs2, 6, d2, h2, w2), (bs2, 1, d2, h2, w2)]
    for o, r, es in zip(outs2, refs2, shapes2):
        assert o.shape == es, (o.shape, es)
        assert bool(jnp.allclose(o, r, **tol)), float(jnp.max(jnp.abs(o - r)))

    print("KERNEL_OK")
</pallas_src>

<mosaic_0001>
module attributes {stable_mosaic.version = 11 : i64} {
  func.func @kernel(%arg0: i32, %arg1: i32, %arg2: memref<1x32x64xbf16, #tpu.memory_space<vmem>>, %arg3: memref<112x32xbf16, #tpu.memory_space<vmem>>, %arg4: memref<112x1xf32, #tpu.memory_space<vmem>>, %arg5: memref<2x16x16xbf16, #tpu.memory_space<vmem>>, %arg6: memref<2x16x1xf32, #tpu.memory_space<vmem>>, %arg7: memref<2x32x16xbf16, #tpu.memory_space<vmem>>, %arg8: memref<2x32x1xf32, #tpu.memory_space<vmem>>, %arg9: memref<1x32x64xbf16, #tpu.memory_space<vmem>>, %arg10: memref<1x32x64xbf16, #tpu.memory_space<vmem>>, %arg11: memref<1x6x64xf32, #tpu.memory_space<vmem>>, %arg12: memref<1x1x64xf32, #tpu.memory_space<vmem>>, %arg13: memref<1x32x8xf32, #tpu.memory_space<vmem>>) attributes {dimension_semantics = [#tpu.dimension_semantics<parallel>, #tpu.dimension_semantics<arbitrary>], iteration_bounds = array<i64: 2, 1>, scalar_prefetch = 0 : i64, scratch_operands = 0 : i64, tpu.core_type = #tpu.core_type<tc>, window_params = [{transform_indices = @transform_0, window_bounds = array<i64: 1, 32, 64>}, {pipeline_mode = #tpu.pipeline_mode<synchronous>, transform_indices = @transform_1, window_bounds = array<i64: 112, 32>}, {pipeline_mode = #tpu.pipeline_mode<synchronous>, transform_indices = @transform_2, window_bounds = array<i64: 112, 1>}, {pipeline_mode = #tpu.pipeline_mode<synchronous>, transform_indices = @transform_3, window_bounds = array<i64: 2, 16, 16>}, {pipeline_mode = #tpu.pipeline_mode<synchronous>, transform_indices = @transform_4, window_bounds = array<i64: 2, 16, 1>}, {pipeline_mode = #tpu.pipeline_mode<synchronous>, transform_indices = @transform_5, window_bounds = array<i64: 2, 32, 16>}, {pipeline_mode = #tpu.pipeline_mode<synchronous>, transform_indices = @transform_6, window_bounds = array<i64: 2, 32, 1>}, {transform_indices = @transform_7, window_bounds = array<i64: 1, 32, 64>}, {transform_indices = @transform_8, window_bounds = array<i64: 1, 32, 64>}, {transform_indices = @transform_9, window_bounds = array<i64: 1, 6, 64>}, {transform_indices = @transform_10, window_bounds = array<i64: 1, 1, 64>}, {transform_indices = @transform_11, window_bounds = array<i64: 1, 32, 8>}]} {
    %c0 = arith.constant 0 : index
    %c0_0 = arith.constant 0 : index
    %c0_1 = arith.constant 0 : index
    %0 = vector.load %arg2[%c0, %c0_0, %c0_1] : memref<1x32x64xbf16, #tpu.memory_space<vmem>>, vector<1x32x64xbf16>
    %1 = vector.shape_cast %0 : vector<1x32x64xbf16> to vector<32x64xbf16>
    %c0_2 = arith.constant 0 : index
    %c0_3 = arith.constant 0 : index
    %2 = vector.load %arg3[%c0_2, %c0_3] : memref<112x32xbf16, #tpu.memory_space<vmem>>, vector<112x32xbf16>
    %cst = arith.constant dense<0.000000e+00> : vector<112x64xf32>
    %3 = tpu.matmul %2, %1, %cst {dimension_numbers = #tpu.dot_dimension_numbers<[1], [0], [0], [1], [0, 0, 1, 1], [], []>} : vector<112x32xbf16>, vector<32x64xbf16>, vector<112x64xf32> -> vector<112x64xf32>
    %c0_4 = arith.constant 0 : index
    %c0_5 = arith.constant 0 : index
    %4 = vector.load %arg4[%c0_4, %c0_5] : memref<112x1xf32, #tpu.memory_space<vmem>>, vector<112x1xf32>
    %5 = vector.broadcast %4 : vector<112x1xf32> to vector<112x64xf32>
    %6 = arith.addf %3, %5 : vector<112x64xf32>
    %7 = vector.extract_strided_slice %6 {offsets = [96, 0], sizes = [6, 64], strides = [1, 1]} : vector<112x64xf32> to vector<6x64xf32>
    %c0_6 = arith.constant 0 : index
    %c0_7 = arith.constant 0 : index
    %c0_8 = arith.constant 0 : index
    %8 = vector.load %arg11[%c0_6, %c0_7, %c0_8] : memref<1x6x64xf32, #tpu.memory_space<vmem>>, vector<1x6x64xf32>
    %9 = vector.shape_cast %8 : vector<1x6x64xf32> to vector<6x64xf32>
    %10 = vector.shape_cast %7 : vector<6x64xf32> to vector<1x6x64xf32>
    tpu.vector_store %arg11[%c0_6, %c0_7, %c0_8], %10 {strides = array<i32>} : memref<1x6x64xf32, #tpu.memory_space<vmem>>, vector<1x6x64xf32>,
    %11 = vector.extract_strided_slice %6 {offsets = [104, 0], sizes = [1, 64], strides = [1, 1]} : vector<112x64xf32> to vector<1x64xf32>
    %c0_9 = arith.constant 0 : index
    %c0_10 = arith.constant 0 : index
    %c0_11 = arith.constant 0 : index
    %12 = vector.load %arg12[%c0_9, %c0_10, %c0_11] : memref<1x1x64xf32, #tpu.memory_space<vmem>>, vector<1x1x64xf32>
    %13 = vector.shape_cast %12 : vector<1x1x64xf32> to vector<1x64xf32>
    %14 = vector.shape_cast %11 : vector<1x64xf32> to vector<1x1x64xf32>
    tpu.vector_store %arg12[%c0_9, %c0_10, %c0_11], %14 {strides = array<i32>} : memref<1x1x64xf32, #tpu.memory_space<vmem>>, vector<1x1x64xf32>,
    %15 = vector.extract_strided_slice %6 {offsets = [0, 0], sizes = [8, 64], strides = [1, 1]} : vector<112x64xf32> to vector<8x64xf32>
    %16 = vector.extract_strided_slice %6 {offsets = [32, 0], sizes = [8, 64], strides = [1, 1]} : vector<112x64xf32> to vector<8x64xf32>
    %17 = arith.mulf %15, %16 : vector<8x64xf32>
    %18 = vector.extract_strided_slice %6 {offsets = [8, 0], sizes = [8, 64], strides = [1, 1]} : vector<112x64xf32> to vector<8x64xf32>
    %19 = vector.extract_strided_slice %6 {offsets = [40, 0], sizes = [8, 64], strides = [1, 1]} : vector<112x64xf32> to vector<8x64xf32>
    %20 = arith.mulf %18, %19 : vector<8x64xf32>
    %21 = arith.maximumf %17, %20 : vector<8x64xf32>
    %22 = arith.subf %17, %21 : vector<8x64xf32>
    %23 = math.exp %22 : vector<8x64xf32>
    %24 = arith.subf %20, %21 : vector<8x64xf32>
    %25 = math.exp %24 : vector<8x64xf32>
    %26 = arith.addf %23, %25 : vector<8x64xf32>
    %27 = tpu.reciprocal %26 {approx = true} : vector<8x64xf32> -> vector<8x64xf32>
    %28 = arith.mulf %23, %27 : vector<8x64xf32>
    %29 = vector.extract_strided_slice %6 {offsets = [64, 0], sizes = [8, 64], strides = [1, 1]} : vector<112x64xf32> to vector<8x64xf32>
    %30 = arith.mulf %28, %29 : vector<8x64xf32>
    %31 = arith.mulf %25, %27 : vector<8x64xf32>
    %32 = vector.extract_strided_slice %6 {offsets = [72, 0], sizes = [8, 64], strides = [1, 1]} : vector<112x64xf32> to vector<8x64xf32>
    %33 = arith.mulf %31, %32 : vector<8x64xf32>
    %34 = tpu.concatenate %30, %33 in 0 : vector<8x64xf32>, vector<8x64xf32> -> vector<16x64xf32>
    %35 = arith.truncf %34 : vector<16x64xf32> to vector<16x64xbf16>
    %c0_12 = arith.constant 0 : index
    %c0_13 = arith.constant 0 : index
    %c0_14 = arith.constant 0 : index
    %36 = vector.load %arg5[%c0_12, %c0_13, %c0_14] : memref<2x16x16xbf16, #tpu.memory_space<vmem>>, vector<1x16x16xbf16>
    %37 = vector.shape_cast %36 : vector<1x16x16xbf16> to vector<16x16xbf16>
    %cst_15 = arith.constant dense<0.000000e+00> : vector<16x64xf32>
    %38 = tpu.matmul %37, %35, %cst_15 {dimension_numbers = #tpu.dot_dimension_numbers<[1], [0], [0], [1], [0, 0, 1, 1], [], []>} : vector<16x16xbf16>, vector<16x64xbf16>, vector<16x64xf32> -> vector<16x64xf32>
    %c0_16 = arith.constant 0 : index
    %c0_17 = arith.constant 0 : index
    %c0_18 = arith.constant 0 : index
    %39 = vector.load %arg6[%c0_16, %c0_17, %c0_18] : memref<2x16x1xf32, #tpu.memory_space<vmem>>, vector<1x16x1xf32>
    %40 = vector.shape_cast %39 : vector<1x16x1xf32> to vector<16x1xf32>
    %41 = vector.broadcast %40 : vector<16x1xf32> to vector<16x64xf32>
    %42 = arith.addf %38, %41 : vector<16x64xf32>
    %cst_19 = arith.constant 0.000000e+00 : f32
    %43 = vector.broadcast %cst_19 : f32 to vector<16x64xf32>
    %44 = arith.maximumf %42, %43 : vector<16x64xf32>
    %c0_20 = arith.constant 0 : index
    %c0_21 = arith.constant 0 : index
    %c0_22 = arith.constant 0 : index
    %45 = vector.load %arg7[%c0_20, %c0_21, %c0_22] : memref<2x32x16xbf16, #tpu.memory_space<vmem>>, vector<1x32x16xbf16>
    %46 = vector.shape_cast %45 : vector<1x32x16xbf16> to vector<32x16xbf16>
    %47 = arith.truncf %44 : vector<16x64xf32> to vector<16x64xbf16>
    %cst_23 = arith.constant dense<0.000000e+00> : vector<32x64xf32>
    %48 = tpu.matmul %46, %47, %cst_23 {dimension_numbers = #tpu.dot_dimension_numbers<[1], [0], [0], [1], [0, 0, 1, 1], [], []>} : vector<32x16xbf16>, vector<16x64xbf16>, vector<32x64xf32> -> vector<32x64xf32>
    %c0_24 = arith.constant 0 : index
    %c0_25 = arith.constant 0 : index
    %c0_26 = arith.constant 0 : index
    %49 = vector.load %arg8[%c0_24, %c0_25, %c0_26] : memref<2x32x1xf32, #tpu.memory_space<vmem>>, vector<1x32x1xf32>
    %50 = vector.shape_cast %49 : vector<1x32x1xf32> to vector<32x1xf32>
    %51 = vector.broadcast %50 : vector<32x1xf32> to vector<32x64xf32>
    %52 = arith.addf %48, %51 : vector<32x64xf32>
    %cst_27 = arith.constant 5.000000e-01 : f32
    %53 = vector.broadcast %cst_27 : f32 to vector<32x64xf32>
    %54 = arith.mulf %53, %52 : vector<32x64xf32>
    %55 = arith.truncf %54 : vector<32x64xf32> to vector<32x64xbf16>
    %56 = math.tanh %55 : vector<32x64xbf16>
    %57 = arith.extf %56 : vector<32x64xbf16> to vector<32x64xf32>
    %cst_28 = arith.constant 1.000000e+00 : f32
    %58 = vector.broadcast %cst_28 : f32 to vector<32x64xf32>
    %59 = arith.addf %57, %58 : vector<32x64xf32>
    %cst_29 = arith.constant 5.000000e-01 : f32
    %60 = vector.broadcast %cst_29 : f32 to vector<32x64xf32>
    %61 = arith.mulf %60, %59 : vector<32x64xf32>
    %62 = arith.truncf %61 : vector<32x64xf32> to vector<32x64xbf16>
    %c0_30 = arith.constant 0 : index
    %c0_31 = arith.constant 0 : index
    %c0_32 = arith.constant 0 : index
    %63 = vector.load %arg9[%c0_30, %c0_31, %c0_32] : memref<1x32x64xbf16, #tpu.memory_space<vmem>>, vector<1x32x64xbf16>
    %64 = vector.shape_cast %63 : vector<1x32x64xbf16> to vector<32x64xbf16>
    %65 = vector.shape_cast %62 : vector<32x64xbf16> to vector<1x32x64xbf16>
    tpu.vector_store %arg9[%c0_30, %c0_31, %c0_32], %65 {strides = array<i32>} : memref<1x32x64xbf16, #tpu.memory_space<vmem>>, vector<1x32x64xbf16>,
    %cst_33 = arith.constant dense<0xFF800000> : vector<32xf32>
    %66 = vector.multi_reduction <maximumf>, %61, %cst_33 [1] : vector<32x64xf32> to vector<32xf32>
    %67 = vector.shape_cast %66 : vector<32xf32> to vector<32x1xf32>
    %cst_34 = arith.constant dense<0.000000e+00> : vector<32xf32>
    %68 = vector.multi_reduction <add>, %61, %cst_34 [1] : vector<32x64xf32> to vector<32xf32>
    %69 = vector.shape_cast %68 : vector<32xf32> to vector<32x1xf32>
    %cst_35 = arith.constant dense<0x7F800000> : vector<32xf32>
    %70 = vector.multi_reduction <minimumf>, %61, %cst_35 [1] : vector<32x64xf32> to vector<32xf32>
    %71 = vector.shape_cast %70 : vector<32xf32> to vector<32x1xf32>
    %72 = vector.extract_strided_slice %6 {offsets = [16, 0], sizes = [8, 64], strides = [1, 1]} : vector<112x64xf32> to vector<8x64xf32>
    %73 = vector.extract_strided_slice %6 {offsets = [48, 0], sizes = [8, 64], strides = [1, 1]} : vector<112x64xf32> to vector<8x64xf32>
    %74 = arith.mulf %72, %73 : vector<8x64xf32>
    %75 = vector.extract_strided_slice %6 {offsets = [24, 0], sizes = [8, 64], strides = [1, 1]} : vector<112x64xf32> to vector<8x64xf32>
    %76 = vector.extract_strided_slice %6 {offsets = [56, 0], sizes = [8, 64], strides = [1, 1]} : vector<112x64xf32> to vector<8x64xf32>
    %77 = arith.mulf %75, %76 : vector<8x64xf32>
    %78 = arith.maximumf %74, %77 : vector<8x64xf32>
    %79 = arith.subf %74, %78 : vector<8x64xf32>
    %80 = math.exp %79 : vector<8x64xf32>
    %81 = arith.subf %77, %78 : vector<8x64xf32>
    %82 = math.exp %81 : vector<8x64xf32>
    %83 = arith.addf %80, %82 : vector<8x64xf32>
    %84 = tpu.reciprocal %83 {approx = true} : vector<8x64xf32> -> vector<8x64xf32>
    %85 = arith.mulf %80, %84 : vector<8x64xf32>
    %86 = vector.extract_strided_slice %6 {offsets = [80, 0], sizes = [8, 64], strides = [1, 1]} : vector<112x64xf32> to vector<8x64xf32>
    %87 = arith.mulf %85, %86 : vector<8x64xf32>
    %88 = arith.mulf %82, %84 : vector<8x64xf32>
    %89 = vector.extract_strided_slice %6 {offsets = [88, 0], sizes = [8, 64], strides = [1, 1]} : vector<112x64xf32> to vector<8x64xf32>
    %90 = arith.mulf %88, %89 : vector<8x64xf32>
    %91 = tpu.concatenate %87, %90 in 0 : vector<8x64xf32>, vector<8x64xf32> -> vector<16x64xf32>
    %92 = arith.truncf %91 : vector<16x64xf32> to vector<16x64xbf16>
    %c1 = arith.constant 1 : index
    %c0_36 = arith.constant 0 : index
    %c0_37 = arith.constant 0 : index
    %93 = vector.load %arg5[%c1, %c0_36, %c0_37] : memref<2x16x16xbf16, #tpu.memory_space<vmem>>, vector<1x16x16xbf16>
    %94 = vector.shape_cast %93 : vector<1x16x16xbf16> to vector<16x16xbf16>
    %cst_38 = arith.constant dense<0.000000e+00> : vector<16x64xf32>
    %95 = tpu.matmul %94, %92, %cst_38 {dimension_numbers = #tpu.dot_dimension_numbers<[1], [0], [0], [1], [0, 0, 1, 1], [], []>} : vector<16x16xbf16>, vector<16x64xbf16>, vector<16x64xf32> -> vector<16x64xf32>
    %c1_39 = arith.constant 1 : index
    %c0_40 = arith.constant 0 : index
    %c0_41 = arith.constant 0 : index
    %96 = vector.load %arg6[%c1_39, %c0_40, %c0_41] : memref<2x16x1xf32, #tpu.memory_space<vmem>>, vector<1x16x1xf32>
    %97 = vector.shape_cast %96 : vector<1x16x1xf32> to vector<16x1xf32>
    %98 = vector.broadcast %97 : vector<16x1xf32> to vector<16x64xf32>
    %99 = arith.addf %95, %98 : vector<16x64xf32>
    %cst_42 = arith.constant 0.000000e+00 : f32
    %100 = vector.broadcast %cst_42 : f32 to vector<16x64xf32>
    %101 = arith.maximumf %99, %100 : vector<16x64xf32>
    %c1_43 = arith.constant 1 : index
    %c0_44 = arith.constant 0 : index
    %c0_45 = arith.constant 0 : index
    %102 = vector.load %arg7[%c1_43, %c0_44, %c0_45] : memref<2x32x16xbf16, #tpu.memory_space<vmem>>, vector<1x32x16xbf16>
    %103 = vector.shape_cast %102 : vector<1x32x16xbf16> to vector<32x16xbf16>
    %104 = arith.truncf %101 : vector<16x64xf32> to vector<16x64xbf16>
    %cst_46 = arith.constant dense<0.000000e+00> : vector<32x64xf32>
    %105 = tpu.matmul %103, %104, %cst_46 {dimension_numbers = #tpu.dot_dimension_numbers<[1], [0], [0], [1], [0, 0, 1, 1], [], []>} : vector<32x16xbf16>, vector<16x64xbf16>, vector<32x64xf32> -> vector<32x64xf32>
    %c1_47 = arith.constant 1 : index
    %c0_48 = arith.constant 0 : index
    %c0_49 = arith.constant 0 : index
    %106 = vector.load %arg8[%c1_47, %c0_48, %c0_49] : memref<2x32x1xf32, #tpu.memory_space<vmem>>, vector<1x32x1xf32>
    %107 = vector.shape_cast %106 : vector<1x32x1xf32> to vector<32x1xf32>
    %108 = vector.broadcast %107 : vector<32x1xf32> to vector<32x64xf32>
    %109 = arith.addf %105, %108 : vector<32x64xf32>
    %cst_50 = arith.constant 5.000000e-01 : f32
    %110 = vector.broadcast %cst_50 : f32 to vector<32x64xf32>
    %111 = arith.mulf %110, %109 : vector<32x64xf32>
    %112 = arith.truncf %111 : vector<32x64xf32> to vector<32x64xbf16>
    %113 = math.tanh %112 : vector<32x64xbf16>
    %114 = arith.extf %113 : vector<32x64xbf16> to vector<32x64xf32>
    %cst_51 = arith.constant 1.000000e+00 : f32
    %115 = vector.broadcast %cst_51 : f32 to vector<32x64xf32>
    %116 = arith.addf %114, %115 : vector<32x64xf32>
    %cst_52 = arith.constant 5.000000e-01 : f32
    %117 = vector.broadcast %cst_52 : f32 to vector<32x64xf32>
    %118 = arith.mulf %117, %116 : vector<32x64xf32>
    %119 = arith.truncf %118 : vector<32x64xf32> to vector<32x64xbf16>
    %c0_53 = arith.constant 0 : index
    %c0_54 = arith.constant 0 : index
    %c0_55 = arith.constant 0 : index
    %120 = vector.load %arg10[%c0_53, %c0_54, %c0_55] : memref<1x32x64xbf16, #tpu.memory_space<vmem>>, vector<1x32x64xbf16>
    %121 = vector.shape_cast %120 : vector<1x32x64xbf16> to vector<32x64xbf16>
    %122 = vector.shape_cast %119 : vector<32x64xbf16> to vector<1x32x64xbf16>
    tpu.vector_store %arg10[%c0_53, %c0_54, %c0_55], %122 {strides = array<i32>} : memref<1x32x64xbf16, #tpu.memory_space<vmem>>, vector<1x32x64xbf16>,
    %cst_56 = arith.constant dense<0xFF800000> : vector<32xf32>
    %123 = vector.multi_reduction <maximumf>, %118, %cst_56 [1] : vector<32x64xf32> to vector<32xf32>
    %124 = vector.shape_cast %123 : vector<32xf32> to vector<32x1xf32>
    %cst_57 = arith.constant dense<0.000000e+00> : vector<32xf32>
    %125 = vector.multi_reduction <add>, %118, %cst_57 [1] : vector<32x64xf32> to vector<32xf32>
    %126 = vector.shape_cast %125 : vector<32xf32> to vector<32x1xf32>
    %cst_58 = arith.constant dense<0x7F800000> : vector<32xf32>
    %127 = vector.multi_reduction <minimumf>, %118, %cst_58 [1] : vector<32x64xf32> to vector<32xf32>
    %128 = vector.shape_cast %127 : vector<32xf32> to vector<32x1xf32>
    %cst_59 = arith.constant 0.000000e+00 : f32
    %129 = vector.broadcast %cst_59 : f32 to vector<32x1xf32>
    %130 = tpu.concatenate %67, %69, %71, %124, %126, %128, %129, %129 in 1 : vector<32x1xf32>, vector<32x1xf32>, vector<32x1xf32>, vector<32x1xf32>, vector<32x1xf32>, vector<32x1xf32>, vector<32x1xf32>, vector<32x1xf32> -> vector<32x8xf32>
    %c0_i32 = arith.constant 0 : i32
    %131 = arith.cmpi eq, %arg1, %c0_i32 : i32
    %132 = arith.extui %131 : i1 to i32
    %c0_i32_60 = arith.constant 0 : i32
    %133 = arith.cmpi ne, %132, %c0_i32_60 : i32
    scf.if %133 {
      %c0_63 = arith.constant 0 : index
      %c0_64 = arith.constant 0 : index
      %c0_65 = arith.constant 0 : index
      %137 = vector.load %arg13[%c0_63, %c0_64, %c0_65] : memref<1x32x8xf32, #tpu.memory_space<vmem>>, vector<1x32x8xf32>
      %138 = vector.shape_cast %137 : vector<1x32x8xf32> to vector<32x8xf32>
      %139 = vector.shape_cast %130 : vector<32x8xf32> to vector<1x32x8xf32>
      tpu.vector_store %arg13[%c0_63, %c0_64, %c0_65], %139 {strides = array<i32>} : memref<1x32x8xf32, #tpu.memory_space<vmem>>, vector<1x32x8xf32>,
    } else {
    }
    %c0_i32_61 = arith.constant 0 : i32
    %134 = arith.cmpi ne, %arg1, %c0_i32_61 : i32
    %135 = arith.extui %134 : i1 to i32
    %c0_i32_62 = arith.constant 0 : i32
    %136 = arith.cmpi ne, %135, %c0_i32_62 : i32
    scf.if %136 {
      %c0_63 = arith.constant 0 : index
      %c0_64 = arith.constant 0 : index
      %c0_65 = arith.constant 0 : index
      %137 = vector.load %arg13[%c0_63, %c0_64, %c0_65] : memref<1x32x8xf32, #tpu.memory_space<vmem>>, vector<1x32x8xf32>
      %138 = vector.shape_cast %137 : vector<1x32x8xf32> to vector<32x8xf32>
      %139 = tpu.iota {dimensions = array<i32: 1>} : vector<32x8xi32>
      %c0_i32_66 = arith.constant 0 : i32
      %140 = vector.broadcast %c0_i32_66 : i32 to vector<32x8xi32>
      %141 = arith.cmpi eq, %139, %140 : vector<32x8xi32>
      %c3_i32 = arith.constant 3 : i32
      %142 = vector.broadcast %c3_i32 : i32 to vector<32x8xi32>
      %143 = arith.cmpi eq, %139, %142 : vector<32x8xi32>
      %144 = arith.ori %141, %143 : vector<32x8xi1>
      %c2_i32 = arith.constant 2 : i32
      %145 = vector.broadcast %c2_i32 : i32 to vector<32x8xi32>
      %146 = arith.cmpi eq, %139, %145 : vector<32x8xi32>
      %c5_i32 = arith.constant 5 : i32
      %147 = vector.broadcast %c5_i32 : i32 to vector<32x8xi32>
      %148 = arith.cmpi eq, %139, %147 : vector<32x8xi32>
      %149 = arith.ori %146, %148 : vector<32x8xi1>
      %150 = arith.maximumf %138, %130 : vector<32x8xf32>
      %151 = arith.minimumf %138, %130 : vector<32x8xf32>
      %152 = arith.addf %138, %130 : vector<32x8xf32>
      %153 = arith.select %149, %151, %152 : vector<32x8xi1>, vector<32x8xf32>
      %154 = arith.select %144, %150, %153 : vector<32x8xi1>, vector<32x8xf32>
      %c0_67 = arith.constant 0 : index
      %c0_68 = arith.constant 0 : index
      %c0_69 = arith.constant 0 : index
      %155 = vector.load %arg13[%c0_67, %c0_68, %c0_69] : memref<1x32x8xf32, #tpu.memory_space<vmem>>, vector<1x32x8xf32>
      %156 = vector.shape_cast %155 : vector<1x32x8xf32> to vector<32x8xf32>
      %157 = vector.shape_cast %154 : vector<32x8xf32> to vector<1x32x8xf32>
      tpu.vector_store %arg13[%c0_67, %c0_68, %c0_69], %157 {strides = array<i32>} : memref<1x32x8xf32, #tpu.memory_space<vmem>>, vector<1x32x8xf32>,
    } else {
    }
    return
  }
  func.func @transform_0(%arg0: i32, %arg1: i32) -> (i32, i32, i32) {
    %c0_i32 = arith.constant 0 : i32
    %c0_i32_0 = arith.constant 0 : i32
    return %arg0, %c0_i32, %arg1 : i32, i32, i32
  }
  func.func @transform_1(%arg0: i32, %arg1: i32) -> (i32, i32) {
    %c0_i32 = arith.constant 0 : i32
    %c0_i32_0 = arith.constant 0 : i32
    %c0_i32_1 = arith.constant 0 : i32
    return %c0_i32, %c0_i32_0 : i32, i32
  }
  func.func @transform_2(%arg0: i32, %arg1: i32) -> (i32, i32) {
    %c0_i32 = arith.constant 0 : i32
    %c0_i32_0 = arith.constant 0 : i32
    %c0_i32_1 = arith.constant 0 : i32
    return %c0_i32, %c0_i32_0 : i32, i32
  }
  func.func @transform_3(%arg0: i32, %arg1: i32) -> (i32, i32, i32) {
    %c0_i32 = arith.constant 0 : i32
    %c0_i32_0 = arith.constant 0 : i32
    %c0_i32_1 = arith.constant 0 : i32
    %c0_i32_2 = arith.constant 0 : i32
    return %c0_i32, %c0_i32_0, %c0_i32_1 : i32, i32, i32
  }
  func.func @transform_4(%arg0: i32, %arg1: i32) -> (i32, i32, i32) {
    %c0_i32 = arith.constant 0 : i32
    %c0_i32_0 = arith.constant 0 : i32
    %c0_i32_1 = arith.constant 0 : i32
    %c0_i32_2 = arith.constant 0 : i32
    return %c0_i32, %c0_i32_0, %c0_i32_1 : i32, i32, i32
  }
  func.func @transform_5(%arg0: i32, %arg1: i32) -> (i32, i32, i32) {
    %c0_i32 = arith.constant 0 : i32
    %c0_i32_0 = arith.constant 0 : i32
    %c0_i32_1 = arith.constant 0 : i32
    %c0_i32_2 = arith.constant 0 : i32
    return %c0_i32, %c0_i32_0, %c0_i32_1 : i32, i32, i32
  }
  func.func @transform_6(%arg0: i32, %arg1: i32) -> (i32, i32, i32) {
    %c0_i32 = arith.constant 0 : i32
    %c0_i32_0 = arith.constant 0 : i32
    %c0_i32_1 = arith.constant 0 : i32
    %c0_i32_2 = arith.constant 0 : i32
    return %c0_i32, %c0_i32_0, %c0_i32_1 : i32, i32, i32
  }
  func.func @transform_7(%arg0: i32, %arg1: i32) -> (i32, i32, i32) {
    %c0_i32 = arith.constant 0 : i32
    %c0_i32_0 = arith.constant 0 : i32
    return %arg0, %c0_i32, %arg1 : i32, i32, i32
  }
  func.func @transform_8(%arg0: i32, %arg1: i32) -> (i32, i32, i32) {
    %c0_i32 = arith.constant 0 : i32
    %c0_i32_0 = arith.constant 0 : i32
    return %arg0, %c0_i32, %arg1 : i32, i32, i32
  }
  func.func @transform_9(%arg0: i32, %arg1: i32) -> (i32, i32, i32) {
    %c0_i32 = arith.constant 0 : i32
    %c0_i32_0 = arith.constant 0 : i32
    return %arg0, %c0_i32, %arg1 : i32, i32, i32
  }
  func.func @transform_10(%arg0: i32, %arg1: i32) -> (i32, i32, i32) {
    %c0_i32 = arith.constant 0 : i32
    %c0_i32_0 = arith.constant 0 : i32
    return %arg0, %c0_i32, %arg1 : i32, i32, i32
  }
  func.func @transform_11(%arg0: i32, %arg1: i32) -> (i32, i32, i32) {
    %c0_i32 = arith.constant 0 : i32
    %c0_i32_0 = arith.constant 0 : i32
    %c0_i32_1 = arith.constant 0 : i32
    return %arg0, %c0_i32, %c0_i32_0 : i32, i32, i32
  }
}

</mosaic_0001>

<bundles_post_ra>
// kernel: tpu_custom_call.1
= control target key start
LH: loop header
LB: loop body
LE: loop exit
PB: predicated region body
PF: predicated region fallthrough
CT: control target
= control target key end

     0   :  { %s2551_s0 = inlined_call_operand.vmem [shape: bf16[2,32,64], index: 0, kind: input, shape index: {}]   ;;  %s2552_s1 = inlined_call_operand.vmem [shape: bf16[112,32], index: 1, kind: input, shape index: {}]   ;;  %s2553_s2 = inlined_call_operand.vmem [shape: f32[112,1], index: 2, kind: input, shape index: {}]   ;;  %s2554_s3 = inlined_call_operand.vmem [shape: bf16[2,16,16], index: 3, kind: input, shape index: {}]   ;;  %s2555_s4 = inlined_call_operand.vmem [shape: f32[2,16,1], index: 4, kind: input, shape index: {}]   ;;  %s2556_s5 = inlined_call_operand.vmem [shape: bf16[2,32,16], index: 5, kind: input, shape index: {}]   ;;  %s2557_s6 = inlined_call_operand.vmem [shape: f32[2,32,1], index: 6, kind: input, shape index: {}]   ;;  %s2558_s7 = inlined_call_operand.hbm [shape: bf16[2,32,64], index: 7, kind: output, shape index: {0}]   ;;  %s2559_s8 = inlined_call_operand.hbm [shape: bf16[2,32,64], index: 8, kind: output, shape index: {1}]   ;;  %s2560_s9 = inlined_call_operand.vmem [shape: f32[2,6,64], index: 9, kind: output, shape index: {2}]   ;;  %s2561_s10 = inlined_call_operand.hbm [shape: f32[2,1,64], index: 10, kind: output, shape index: {3}]   ;;  %s2562_s11 = inlined_call_operand.vmem [shape: f32[2,32,8], index: 11, kind: output, shape index: {4}]  }
   0x1   :  { %2568 = sst [smem:[#allocation10_spill]] %s2551_s0 }
   0x2   :  { %2569 = sst [smem:[#allocation11_spill]] %s2552_s1 }
   0x3   :  { %2570 = sst [smem:[#allocation12_spill]] %s2553_s2 }
   0x4   :  { %2571 = sst [smem:[#allocation13_spill]] %s2554_s3 }
   0x5   :  { %2572 = sst [smem:[#allocation14_spill]] %s2555_s4 }
   0x6   :  { %2573 = sst [smem:[#allocation15_spill]] %s2556_s5 }
   0x7   :  { %2574 = sst [smem:[#allocation16_spill]] %s2557_s6 }
   0x8   :  { %2575 = sst [smem:[#allocation17_spill]] %s2559_s8 }
   0x9   :  { %2576 = sst [smem:[#allocation18_spill]] %s2560_s9 }
   0xa   :  { %17 = vsyncpa [#allocation3], 0 }
   0xb   :  { %19 = vsyncpa [#allocation3 + $0x1], 0 }
   0xc   :  { %20 = vsyncpa [#allocation5], 0 }
   0xd   :  { %22 = vsyncpa [#allocation5 + $0x1], 0  ;;  %s2062_s17 = smov 0   ;;  %s2064_s18 = smov 0  }
   0xe   :  { %s2066_s19 = smov 0   ;;  %s2068_s20 = smov 0  }
   0xf   :  { %s2070_s21 = smov 0   ;;  %s2072_s22 = smov 0  }
  0x10 LB: > { %s2564_s23 = sadd.s32 4294967295, %s1992_s22   ;;  %s2563_s24 = sadd.s32 4294967294, %s1992_s22   ;;  %s1992_s22 = sphi %s2072_s22, %s28_s22   ;;  %s1988_s21 = sphi %s2070_s21, %s2598_s21   ;;  %s1984_s20 = sphi %s2068_s20, %s2597_s20   ;;  %s1980_s19 = sphi %s2066_s19, %s2596_s19   ;;  %s1976_s18 = sphi %s2064_s18, %s2595_s18   ;;  %s1972_s17 = sphi %s2062_s17, %s2594_s17  }
  0x11   : > { %s40_s25 = sadd.s32 1, %s1988_s21  ;;  %s203_s26 = sadd.s32 1, %s1980_s19 }
  0x12   : > { %p42_p0 = scmp.ge.s32.totalorder %s40_s25, 2  ;;  %p213_p1 = scmp.ne.s32.totalorder %s1980_s19, %s1976_s18 }
  0x13   : > { %p214_p2 = scmp.eq.s32.totalorder %s2564_s23, 1  ;;  %p219_p3 = scmp.ne.s32.totalorder %s1976_s18, %s1972_s17 }
  0x14   : > { %s2600_s25 = smov (%p42_p0, %s40_s25), 0  ;;  %p220_p5 = scmp.eq.s32.totalorder %s2563_s24, 1 }
  0x15   : > { %2577 = sst [smem:[#allocation9_spill]] %s2600_s25  ;;  %p2104_p4 = por %p214_p2, %p213_p1 }
  0x16   : > { %s198_s28 = ssub.s32 %s1988_s21, %s2600_s25  ;;  %p1591_p6 = scmp.ge.s32.totalorder %s1992_s22, 1 }
  0x17   : > { %p201_p7 = scmp.eq.s32.totalorder %s198_s28, 0  ;;  %p2113_p8 = por %p220_p5, %p219_p3 }
  0x18   : > { %p377_p9 = scmp.lt.s32.totalorder %s1992_s22, 3 }
  0x19   : > { %s2119_s30 = scalar_select %p201_p7, %s1980_s19, %s203_s26  }
  0x1a   : > { %p378_p10 = pnand %p1591_p6, %p377_p9 }
  0x1b   : > { %p441_p11 = scmp.lt.s32.totalorder (!%p378_p10), %s1984_s20, 1  ;;  %v1994_v0 = vmov (!%p378_p10), 0.0   ;;  %vm1995_vm0 = vmmov (!%p378_p10), 0   ;;  %s2580_s0 = sld [smem:[#allocation10_spill]] (!%p378_p10)  ;;  %v1996_v2 = vmov (!%p378_p10), 0   ;;  %vm611_vm1 = vcmask (!%p378_p10), 261120  }
  0x1c   : > { %381 = sbr.rel (%p378_p10) target bundleno = 1182 (0x49e), region = 48  ;;  %1687 = vmatprep.subr.bf16.mxu0 (!%p378_p10), %v1994_v0  ;;  %1691 = vmatprep.mubr.msk.bf16.mxu0 (!%p378_p10), %vm1995_vm0, %v1994_v0  ;;  %s2581_s2 = sld [smem:[#allocation12_spill]] (!%p378_p10)  ;;  %vm722_vm2 = vcmask (!%p378_p10), 521216   ;;  %vm724_vm3 = vcmask (!%p378_p10), 516096   ;;  %vm761_vm4 = vcmask (!%p378_p10), 130048   ;;  %vm943_vm5 = vcmask (!%p378_p10), 523264  }
  0x1d   : > { %1743 = vmatprep.subr.bf16.mxu1 (!%p378_p10), %v1994_v0  ;;  %1715 = vmatprep.mubr.msk.bf16.mxu1 (!%p378_p10), %vm1995_vm0, %v1994_v0  ;;  %s2582_s1 = sld [smem:[#allocation11_spill]] (!%p378_p10)  ;;  %s2583_s4 = sld [smem:[#allocation14_spill]] (!%p378_p10)  ;;  %vm938_vm6 = vcmask (!%p378_p10), 519168  }
  0x1e   : > { %1818 = vset.pattern.permute.xlu1 (!%p378_p10), %v1996_v2  ;;  %1817 = vset.pattern.permute.xlu0 (!%p378_p10), %v1996_v2  ;;  %s2584_s6 = sld [smem:[#allocation16_spill]] (!%p378_p10)  ;;  %s2290_s14 = sand.u32 (!%p378_p10), 1, %s1976_s18  }
  0x1f   : > { %s2585_s9 = sld [smem:[#allocation18_spill]] (!%p378_p10)  ;;  %s2566_s28 = scalar_lea.vmem (!%p378_p10), [#allocation6], %s2290_s14 }
  0x20   : > { %s2586_s3 = sld [smem:[#allocation13_spill]] (!%p378_p10)  ;;  %s2587_s5 = sld [smem:[#allocation15_spill]] (!%p378_p10) }
  0x21   : > { %s2588_s24 = sadd.s32 (!%p378_p10), 4294967295, %s1992_s22   ;;  %s2567_s25 = sshll.u32 (!%p378_p10), %s1984_s20, 8 }
  0x22   : > { %v484_v4 = vld [vmem:[%s2581_s2 + $0x20] sm:$0xff] (!%p378_p10)  ;;  %v485_v8 = vld [vmem:[%s2581_s2 + $0x28] sm:$0xff] (!%p378_p10)  ;;  %v483_v13 = vld [vmem:[%s2581_s2 + $0x18] sm:$0xff] (!%p378_p10)  ;;  %s2589_s8 = sld [smem:[#allocation17_spill]] (!%p378_p10) }
  0x23   : > { %s2126_s12 = scalar_select %p441_p11, %s1984_s20, 1  ;;  %v480_v5 = vld [vmem:[%s2581_s2] sm:$0xff]  ;;  %516 = vperm.xlu1 %1818, %v484_v4   ;;  %v1823_v7 = vld [vmem:[%s2582_s1 + $0x30] sm:$0xff]   ;;  %v481_v9 = vld [vmem:[%s2581_s2 + $0x8] sm:$0xff] }
  0x24   : > { %v1821_v6 = vld [vmem:[%s2582_s1] sm:$0xff]   ;;  %496 = vperm.xlu0 %1817, %v480_v5   ;;  %v489_v10 = vld [vmem:[%s2581_s2 + $0x48] sm:$0xff]  ;;  %v482_v14 = vld [vmem:[%s2581_s2 + $0x10] sm:$0xff] }
  0x25   : > { %s1656_s13 = sshll.u32 %s2126_s12, 4  ;;  %v488_v11 = vld [vmem:[%s2581_s2 + $0x40] sm:$0xff]  ;;  %v1822_v12 = vld [vmem:[%s2582_s1 + $0x8] sm:$0xff]   ;;  %v487_v15 = vld [vmem:[%s2581_s2 + $0x38] sm:$0xff] }
  0x26   : > { %s448_s16 = scalar_lea.vmem %s2580_s0, %s1656_s13  ;;  %v486_v16 = vld [vmem:[%s2581_s2 + $0x30] sm:$0xff]  ;;  %v745_v18 = vld [vmem:[%s2583_s4 + $0x8] sm:$0xff]  ;;  %v744_v19 = vld [vmem:[%s2583_s4] sm:$0xff]  ;;  %s1596_s13 = sshll.u32 %s2126_s12, 3 }
  0x27   : > { %v1819_v1 = vld [vmem:[%s448_s16] sm:$0xff]   ;;  %v1820_v3 = vld [vmem:[%s448_s16 + $0x8] sm:$0xff]   ;;  %521 = vperm.xlu1 %1818, %v485_v8   ;;  %v1824_v17 = vld [vmem:[%s2582_s1 + $0x10] sm:$0xff]   ;;  %s455_s26 = scalar_lea.vmem %s2585_s9, %s1596_s13  ;;  %s1592_s13 = sshll.u32 %s2290_s14, 4 }
  0x28   : > { %1688 = vmatpush3.bf16.msra.mxu0 %v1819_v1  ;;  %1745 = vmatpush3.bf16.msra.mxu1 %v1819_v1  ;;  %v491_v20 = vld [vmem:[%s2581_s2 + $0x58] sm:$0xff]  ;;  %v490_v21 = vld [vmem:[%s2581_s2 + $0x50] sm:$0xff]  ;;  %v814_v25 = vld [vmem:[%s2584_s6 + $0x8] sm:$0xff]  ;;  %s2342_s15 = scalar_lea.vmem [#allocation2], %s1592_s13  ;;  %s418_s16 = scalar_lea.vmem [#allocation4], %s1592_s13 }
  0x29   : > { %1689 = vmatprep.subr.bf16.mxu0 %v1994_v0  ;;  %1744 = vmatprep.subr.bf16.mxu1 %v1994_v0  ;;  %v1825_v22 = vld [vmem:[%s2582_s1 + $0x18] sm:$0xff]   ;;  %v1627_v24 = vld [vmem:[%s2583_s4 + $0x10] sm:$0xff]  ;;  %v813_v26 = vld [vmem:[%s2584_s6] sm:$0xff]  ;;  %s1373_s23 = sshll.u32 %s418_s16, 4  ;;  %s2391_s0 = sand.u32 1, %s2588_s24   ;;  %s2387_s23 = int_to_ptr.vmem [resolvable:$true] %s1373_s23 }
  0x2a   : > { %501 = vperm.xlu0 %1817, %v481_v9   ;;  %v1628_v23 = vld [vmem:[%s2583_s4 + $0x18] sm:$0xff]  ;;  %v1826_v27 = vld [vmem:[%s2582_s1 + $0x20] sm:$0xff]   ;;  %v815_v29 = vld [vmem:[%s2584_s6 + $0x10] sm:$0xff] }
  0x2b   : > { %541 = vperm.xlu1 %1818, %v489_v10   ;;  %v816_v28 = vld [vmem:[%s2584_s6 + $0x18] sm:$0xff]  ;;  %v1636_v30 = vld [vmem:[%s2584_s6 + $0x28] sm:$0xff]  ;;  %v1635_v31 = vld [vmem:[%s2584_s6 + $0x20] sm:$0xff] }
  0x2c   : > { %1690 = vmatpush3.bf16.msra.mxu0 %v1820_v3  ;;  %1746 = vmatpush3.bf16.msra.mxu1 %v1820_v3  ;;  %v1827_v32 = vld [vmem:[%s2582_s1 + $0x28] sm:$0xff]   ;;  %v1638_v33 = vld [vmem:[%s2584_s6 + $0x38] sm:$0xff]  ;;  %v1637_v34 = vld [vmem:[%s2584_s6 + $0x30] sm:$0xff]  ;;  %s2399_s1 = scalar_lea.hbm %s2589_s8, %s2567_s25 }
  0x2d   : > { %1719 = vmatprep.subr.bf16.mxu1 %v1994_v0  ;;  %v493_v35 = vld [vmem:[%s2581_s2 + $0x68] sm:$0xff]  ;;  %v492_v36 = vld [vmem:[%s2581_s2 + $0x60] sm:$0xff]  ;;  %s1997_s2 = smov [#allocation4]  }
  0x2e   : > { %536 = vperm.xlu0 %1817, %v488_v11  }
  0x2f   : > { %1692 = vmatmul.mubr.msk.bf16.vlgmr.msra.gmra.mrb[0].mxu0 %vm611_vm1, %v1821_v6  ;;  %1716 = vmatmul.mubr.msk.bf16.vlgmr.msra.gmra.mrb[0].mxu1 %vm611_vm1, %v1823_v7 }
  0x30   : > { %1695 = vmatprep.mubr.msk.bf16.mxu0 %vm1995_vm0, %v1994_v0  ;;  %1721 = vmatprep.mubr.msk.bf16.mxu1 %vm1995_vm0, %v1994_v0 }
  0x31   : > { %511 = vperm.xlu1 %1818, %v483_v13  }
  0x32   : > { %506 = vperm.xlu0 %1817, %v482_v14  }
  0x35   : > { %531 = vperm.xlu1 %1818, %v487_v15  }
  0x36   : > { %526 = vperm.xlu0 %1817, %v486_v16  }
  0x37   : > { %1696 = vmatmul.mubr.msk.bf16.gmra.mrb[4].mxu0 %vm611_vm1, %v1822_v12 }
  0x38   : > { %1699 = vmatprep.mubr.msk.bf16.mxu0 %vm1995_vm0, %v1994_v0 }
  0x39   : > { %753 = vperm.xlu1 %1818, %v745_v18  }
  0x3a   : > { %748 = vperm.xlu0 %1817, %v744_v19  }
  0x3d   : > { %551 = vperm.xlu1 %1818, %v491_v20  }
  0x3e   : > { %546 = vperm.xlu0 %1817, %v490_v21  }
  0x3f   : > { %1700 = vmatmul.mubr.msk.bf16.gmra.mrb[8].mxu0 %vm611_vm1, %v1824_v17 }
  0x40   : > { %1703 = vmatprep.mubr.msk.bf16.mxu0 %vm1995_vm0, %v1994_v0 }
  0x41   : > { %1009 = vperm.xlu1 %1818, %v1628_v23  }
  0x42   : > { %1004 = vperm.xlu0 %1817, %v1627_v24  }
  0x45   : > { %824 = vperm.xlu1 %1818, %v814_v25  }
  0x46   : > { %819 = vperm.xlu0 %1817, %v813_v26  }
  0x47   : > { %1704 = vmatmul.mubr.msk.bf16.gmra.mrb[12].mxu0 %vm611_vm1, %v1825_v22 }
  0x48   : > { %1707 = vmatprep.mubr.msk.bf16.mxu0 %vm1995_vm0, %v1994_v0 }
  0x49   : > { %834 = vperm.xlu1 %1818, %v816_v28  }
  0x4a   : > { %829 = vperm.xlu0 %1817, %v815_v29  }
  0x4d   : > { %1081 = vperm.xlu1 %1818, %v1636_v30  }
  0x4e   : > { %1076 = vperm.xlu0 %1817, %v1635_v31  }
  0x4f   : > { %1708 = vmatmul.mubr.msk.bf16.gmra.mrb[16].mxu0 %vm611_vm1, %v1826_v27 }
  0x50   : > { %1711 = vmatprep.mubr.msk.bf16.mxu0 %vm1995_vm0, %v1994_v0 }
  0x51   : > { %1091 = vperm.xlu1 %1818, %v1638_v33  }
  0x52   : > { %1086 = vperm.xlu0 %1817, %v1637_v34  }
  0x55   : > { %561 = vperm.xlu1 %1818, %v493_v35  }
  0x56   : > { %556 = vperm.xlu0 %1817, %v492_v36  }
  0x57   : > { %1712 = vmatmul.mubr.msk.bf16.gmra.mrb[20].mxu0 %vm611_vm1, %v1827_v32 }
  0xa2   : > { %v517_v38 = vpop.permute.xlu1 %516 }
  0xa3   : > { %v497_v37 = vpop.permute.xlu0 %496 }
  0xa6   : > { %v522_v40 = vpop.permute.xlu1 %521 }
  0xa9   : > { %v502_v39 = vpop.permute.xlu0 %501 }
  0xaa   : > { %v2258_v42 = vpop.permute.xlu1 %541 }
  0xad   : > { %v2256_v41 = vpop.permute.xlu0 %536 }
  0xb0   : > { %v512_v44 = vpop.permute.xlu1 %511 }
  0xb1   : > { %v507_v43 = vpop.permute.xlu0 %506 }
  0xb4   : > { %v532_v46 = vpop.permute.xlu1 %531 }
  0xb5   : > { %v527_v45 = vpop.permute.xlu0 %526 }
  0xb8   : > { %v2262_v48 = vpop.permute.xlu1 %753 }
  0xb9   : > { %v2260_v47 = vpop.permute.xlu0 %748 }
  0xbc   : > { %v2266_v50 = vpop.permute.xlu1 %551 }
  0xbd   : > { %v2264_v49 = vpop.permute.xlu0 %546 }
  0xc0   : > { %v2270_v52 = vpop.permute.xlu1 %1009 }
  0xc1   : > { %v2268_v51 = vpop.permute.xlu0 %1004 }
  0xc4   : > { %v2274_v54 = vpop.permute.xlu1 %824 }
  0xc5   : > { %v2272_v53 = vpop.permute.xlu0 %819 }
  0xc8   : > { %v2278_v56 = vpop.permute.xlu1 %834 }
  0xc9   : > { %v2276_v55 = vpop.permute.xlu0 %829 }
  0xcc   : > { %v2282_v58 = vpop.permute.xlu1 %1081 }
  0xcd   : > { %v2280_v57 = vpop.permute.xlu0 %1076 }
  0xd0   : > { %v2286_v60 = vpop.permute.xlu1 %1091 }
  0xd1   : > { %v2284_v59 = vpop.permute.xlu0 %1086 }
  0xd4   : > { %v562_v62 = vpop.permute.xlu1 %561 }
  0xd5   : > { %v557_v61 = vpop.permute.xlu0 %556 }
 0x102   : > { %v667_v63 = vpop.f32.mrb[0].mxu0  ;;  %v715_v1 = vpop.f32.mrb[0].mxu1 }
 0x103   : > { %v668_v2 = vadd.f32 %v667_v63, %v497_v37  ;;  %v1693_v3 = vpop.f32.mrb[1].mxu0  ;;  %v1717_v4 = vpop.f32.mrb[1].mxu1  ;;  %v716_v5 = vadd.f32 %v715_v1, %v557_v61 }
 0x104   : > { %v670_v6 = vpop.f32.mrb[2].mxu0  ;;  %v718_v7 = vpop.f32.mrb[2].mxu1 }
 0x105   : > { %v1694_v8 = vpop.f32.mrb[3].mxu0  ;;  %723 = vst.msk [vmem:[%s455_s26] sm:$0x3f] %vm722_vm2, %v716_v5  ;;  %v719_v9 = vadd.f32 %v718_v7, %v562_v62  ;;  %v1718_v10 = vpop.f32.mrb[3].mxu1  ;;  %v671_v19 = vadd.f32 %v670_v6, %v502_v39  ;;  %s1356_s26 = sshll.u32 %s2342_s15, 4  ;;  %s2385_s26 = int_to_ptr.vmem [resolvable:$true] %s1356_s26 }
 0x107   : > { %725 = vst.msk [vmem:[%s2566_s28] sm:$0x1] %vm724_vm3, %v719_v9 }
 0x10a   : > { %v675_v11 = vpop.f32.mrb[4].mxu0 }
 0x10b   : > { %v1697_v12 = vpop.f32.mrb[5].mxu0  ;;  %v676_v26 = vadd.f32 %v675_v11, %v507_v43 }
 0x10c   : > { %v678_v13 = vpop.f32.mrb[6].mxu0 }
 0x10d   : > { %v1698_v14 = vpop.f32.mrb[7].mxu0  ;;  %v679_v31 = vadd.f32 %v678_v13, %v512_v44 }
 0x112   : > { %v683_v15 = vpop.f32.mrb[8].mxu0 }
 0x113   : > { %v684_v16 = vadd.f32 %v683_v15, %v517_v38  ;;  %v1701_v17 = vpop.f32.mrb[9].mxu0 }
 0x114   : > { %v686_v18 = vpop.f32.mrb[10].mxu0 }
 0x115   : > { %v726_v20 = vmul.f32 %v684_v16, %v668_v2  ;;  %v687_v21 = vadd.f32 %v686_v18, %v522_v40  ;;  %v1702_v22 = vpop.f32.mrb[11].mxu0 }
 0x117   : > { %v727_v23 = vmul.f32 %v687_v21, %v671_v19  ;;  %v1828_v19 = vld [vmem:[%s2586_s3] sm:$0xff]  }
 0x119   : > { %v728_v24 = vmax.f32 %v726_v20, %v727_v23 }
 0x11a   : > { %v691_v25 = vpop.f32.mrb[12].mxu0 }
 0x11b   : > { %v729_v27 = vsub.f32 %v726_v20, %v728_v24  ;;  %v732_v28 = vsub.f32 %v727_v23, %v728_v24  ;;  %v692_v29 = vadd.f32 %v691_v25, %v527_v45  ;;  %v1705_v30 = vpop.f32.mrb[13].mxu0 }
 0x11c   : > { %v694_v32 = vpop.f32.mrb[14].mxu0 }
 0x11d   : > { %v730_v33 = vmul.f32 1.442695, %v729_v27  ;;  %v733_v34 = vmul.f32 1.442695, %v732_v28  ;;  %v980_v35 = vmul.f32 %v692_v29, %v676_v26  ;;  %v695_v36 = vadd.f32 %v694_v32, %v532_v46  ;;  %v1706_v37 = vpop.f32.mrb[15].mxu0  ;;  %v1829_v26 = vld [vmem:[%s2587_s5] sm:$0xff]  }
 0x11f   : > { %1834 = vpow2.f32 %v730_v33  ;;  %v981_v38 = vmul.f32 %v695_v36, %v679_v31 }
 0x120   : > { %1836 = vpow2.f32 %v733_v34  ;;  %v1830_v34 = vld [vmem:[%s2587_s5 + $0x8] sm:$0xff]  }
 0x121   : > { %v982_v39 = vmax.f32 %v980_v35, %v981_v38 }
 0x122   : > { %v699_v40 = vpop.f32.mrb[16].mxu0 }
 0x123   : > { %v983_v61 = vsub.f32 %v980_v35, %v982_v39  ;;  %v986_v62 = vsub.f32 %v981_v38, %v982_v39  ;;  %v1709_v63 = vpop.f32.mrb[17].mxu0  ;;  %v700_v12 = vadd.f32 %v699_v40, %v2256_v41 }
 0x124   : > { %v702_v43 = vpop.f32.mrb[18].mxu0 }
 0x125   : > { %v984_v1 = vmul.f32 1.442695, %v983_v61  ;;  %v987_v2 = vmul.f32 1.442695, %v986_v62  ;;  %v1710_v45 = vpop.f32.mrb[19].mxu0  ;;  %v703_v14 = vadd.f32 %v702_v43, %v2258_v42 }
 0x127   : > { %1838 = vpow2.f32 %v984_v1 }
 0x128   : > { %1840 = vpow2.f32 %v987_v2 }
 0x129   : > { %v1835_v44 = vpop.eup %1834 }
 0x12a   : > { %v1837_v3 = vpop.eup %1836  ;;  %v707_v4 = vpop.f32.mrb[20].mxu0 }
 0x12b   : > { %v735_v5 = vadd.f32 %v1837_v3, %v1835_v44  ;;  %v1713_v46 = vpop.f32.mrb[21].mxu0  ;;  %v708_v21 = vadd.f32 %v707_v4, %v2264_v49 }
 0x12c   : > { %v710_v6 = vpop.f32.mrb[22].mxu0 }
 0x12d   : > { %1842 = vrcp.f32 %v735_v5  ;;  %v1714_v7 = vpop.f32.mrb[23].mxu0  ;;  %v711_v23 = vadd.f32 %v710_v6, %v2266_v50  ;;  %v1833_v6 = vld [vmem:[%s2587_s5 + $0x18] sm:$0xff]  }
 0x131   : > { %v1839_v8 = vpop.eup %1838 }
 0x132   : > { %v1841_v9 = vpop.eup %1840 }
 0x133   : > { %v989_v10 = vadd.f32 %v1841_v9, %v1839_v8 }
 0x135   : > { %1844 = vrcp.f32 %v989_v10 }
 0x137   : > { %v1843_v11 = vpop.eup %1842 }
 0x138   : > { %v737_v13 = vmul.f32 %v1843_v11, %v1835_v44  ;;  %v739_v15 = vmul.f32 %v1843_v11, %v1837_v3 }
 0x13a   : > { %v738_v16 = vmul.f32 %v737_v13, %v700_v12  ;;  %v740_v17 = vmul.f32 %v739_v15, %v703_v14 }
 0x13c   : > { %v741_v18 = vpack.c.bf16 %v740_v17, %v738_v16 }
 0x13e   : > { %1720 = vmatpush3.bf16.msra.mxu1 %v741_v18 }
 0x13f   : > { %v1845_v20 = vpop.eup %1844 }
 0x140   : > { %v991_v22 = vmul.f32 %v1845_v20, %v1839_v8  ;;  %v993_v41 = vmul.f32 %v1845_v20, %v1841_v9 }
 0x141   : > { %1722 = vmatmul.mubr.msk.bf16.vlgmr.msra.gmra.mrb[4].mxu1 %vm761_vm4, %v1828_v19 }
 0x142   : > { %v992_v42 = vmul.f32 %v991_v22, %v708_v21  ;;  %v994_v24 = vmul.f32 %v993_v41, %v711_v23  ;;  %1727 = vmatprep.mubr.msk.bf16.mxu1 %vm761_vm4, %v1829_v26 }
 0x144   : > { %v995_v25 = vpack.c.bf16 %v994_v24, %v992_v42 }
 0x214   : > { %v799_v27 = vpop.f32.mrb[4].mxu1 }
 0x215   : > { %v800_v28 = vadd.f32 %v799_v27, %v2260_v47  ;;  %v1723_v29 = vpop.f32.mrb[5].mxu1  ;;  %v1831_v47 = vld [vmem:[%s2586_s3 + $0x8] sm:$0xff]   ;;  %s1858_s3 = sshll.u32 %s1997_s2, 4  ;;  %s1859_s3 = int_to_ptr.vmem [resolvable:$false] %s1858_s3 }
 0x216   : > { %v802_v49 = vpop.f32.mrb[6].mxu1  ;;  %s1860_s4 = scalar_lea.vmem %s1859_s3, 512  ;;  %p1861_p1 = scmp.lt.s32.totalorder %s2387_s23, %s1859_s3 }
 0x217   : > { %v803_v30 = vadd.f32 %v802_v49, %v2262_v48  ;;  %v1724_v50 = vpop.f32.mrb[7].mxu1  ;;  %v806_v31 = vmax.f32 %v800_v28, 0.0  ;;  %v1832_v48 = vld [vmem:[%s2587_s5 + $0x10] sm:$0xff]  }
 0x219   : > { %v807_v32 = vmax.f32 %v803_v30, 0.0 }
 0x21b   : > { %v812_v33 = vpack.c.bf16 %v807_v32, %v806_v31 }
 0x21d   : > { %1725 = vmatprep.subr.bf16.mxu1 %v812_v33 }
 0x21e   : > { %1726 = vmatpush3.bf16.msra.mxu1 %v812_v33 }
 0x21f   : > { %1731 = vmatprep.subr.bf16.mxu1 %v1994_v0 }
 0x221   : > { %1728 = vmatmul.mubr.msk.bf16.vlgmr.msra.gmra.mrb[8].mxu1 %vm761_vm4, %v1830_v34 }
 0x222   : > { %1732 = vmatpush3.bf16.msra.mxu1 %v995_v25  ;;  %1733 = vmatprep.mubr.msk.bf16.mxu1 %vm1995_vm0, %v1994_v0 }
 0x229   : > { %1734 = vmatmul.mubr.msk.bf16.vlgmr.msra.gmra.mrb[12].mxu1 %vm761_vm4, %v1831_v47 }
 0x22a   : > { %1739 = vmatprep.mubr.msk.bf16.mxu1 %vm761_vm4, %v1832_v48 }
 0x2f4   : > { %v1729_v35 = vpop.f32.mrb[8].mxu1 }
 0x2f5   : > { %v896_v36 = vadd.f32 %v1729_v35, %v2276_v55  ;;  %v887_v37 = vpop.f32.mrb[9].mxu1 }
 0x2f6   : > { %v888_v38 = vadd.f32 %v887_v37, %v2272_v53  ;;  %v1730_v39 = vpop.f32.mrb[10].mxu1 }
 0x2f7   : > { %v899_v0 = vadd.f32 %v1730_v39, %v2278_v56  ;;  %v890_v40 = vpop.f32.mrb[11].mxu1  ;;  %v904_v62 = vmul.f32 0.5, %v896_v36 }
 0x2f8   : > { %v891_v61 = vadd.f32 %v890_v40, %v2274_v54  ;;  %v902_v43 = vmul.f32 0.5, %v888_v38 }
 0x2f9   : > { %v905_v63 = vmul.f32 0.5, %v899_v0 }
 0x2fa   : > { %v903_v1 = vmul.f32 0.5, %v891_v61 }
 0x2fb   : > { %v907_v2 = vpack.c.bf16 %v905_v63, %v904_v62 }
 0x2fc   : > { %v906_v45 = vpack.c.bf16 %v903_v1, %v902_v43  ;;  %v1054_v44 = vpop.f32.mrb[12].mxu1 }
 0x2fd   : > { %1846 = vtanh.bf16 %v907_v2  ;;  %v1055_v3 = vadd.f32 %v1054_v44, %v2268_v51  ;;  %v1735_v55 = vpop.f32.mrb[13].mxu1 }
 0x2fe   : > { %1848 = vtanh.bf16 %v906_v45  ;;  %v1057_v4 = vpop.f32.mrb[14].mxu1 }
 0x2ff   : > { %v1058_v53 = vadd.f32 %v1057_v4, %v2270_v52  ;;  %v1736_v56 = vpop.f32.mrb[15].mxu1  ;;  %v1061_v5 = vmax.f32 %v1055_v3, 0.0 }
 0x301   : > { %v1062_v46 = vmax.f32 %v1058_v53, 0.0 }
 0x303   : > { %v1068_v54 = vpack.c.bf16 %v1062_v46, %v1061_v5 }
 0x305   : > { %1737 = vmatprep.subr.bf16.mxu1 %v1068_v54 }
 0x306   : > { %1738 = vmatpush3.bf16.msra.mxu1 %v1068_v54 }
 0x308   : > { %v1847_v7 = vpop.eup %1846 }
 0x309   : > { %v1849_v8 = vpop.eup %1848  ;;  %1740 = vmatmul.mubr.msk.bf16.vlgmr.msra.gmra.mrb[16].mxu1 %vm761_vm4, %v1833_v6  ;;  %v912_v51 = vunpack.c.l.bf16 %v1847_v7  ;;  %v913_v9 = vunpack.c.h.bf16 %v1847_v7 }
 0x30a   : > { %v911_v10 = vunpack.c.h.bf16 %v1849_v8  ;;  %v910_v11 = vunpack.c.l.bf16 %v1849_v8 }
 0x30b   : > { %v916_v52 = vadd.f32 1.0, %v912_v51  ;;  %v917_v12 = vadd.f32 1.0, %v913_v9 }
 0x30c   : > { %v915_v13 = vadd.f32 1.0, %v911_v10  ;;  %v914_v14 = vadd.f32 1.0, %v910_v11 }
 0x30d   : > { %v920_v15 = vmul.f32 0.5, %v916_v52  ;;  %v921_v16 = vmul.f32 0.5, %v917_v12 }
 0x30e   : > { %v919_v17 = vmul.f32 0.5, %v915_v13  ;;  %v918_v18 = vmul.f32 0.5, %v914_v14 }
 0x30f   : > { %v962_v19 = vsel %vm943_vm5, %v920_v15, 0.0  ;;  %v1660_v20 = vpack.c.bf16 %v920_v15, %v920_v15  ;;  %v950_v21 = vsel %vm943_vm5, %v920_v15, -inf  ;;  %v1661_v22 = vpack.c.bf16 %v921_v16, %v921_v16 }
 0x310   : > { %963 = vadd.xlane.f32.xlu1 %v962_v19  ;;  %951 = vmax.xlane.f32.xlu0 %v950_v21  ;;  %v1659_v23 = vpack.c.bf16 %v919_v17, %v919_v17  ;;  %v1658_v41 = vpack.c.bf16 %v918_v18, %v918_v18  ;;  %v974_v42 = vsel %vm943_vm5, %v920_v15, inf  ;;  %v953_v24 = vsel %vm943_vm5, %v921_v16, -inf }
 0x311   : > { %941 = vst.msk [vmem:[%s2342_s15 + $0x8] sm:$0xf] %vm938_vm6, %v1660_v20  ;;  %942 = vst.msk [vmem:[%s2342_s15 + $0xc] sm:$0xf] %vm938_vm6, %v1661_v22  ;;  %v965_v25 = vsel %vm943_vm5, %v921_v16, 0.0  ;;  %v947_v26 = vsel %vm943_vm5, %v919_v17, -inf }
 0x312   : > { %939 = vst.msk [vmem:[%s2342_s15] sm:$0xf] %vm938_vm6, %v1658_v41  ;;  %940 = vst.msk [vmem:[%s2342_s15 + $0x4] sm:$0xf] %vm938_vm6, %v1659_v23  ;;  %v977_v27 = vsel %vm943_vm5, %v921_v16, inf  ;;  %v956_v28 = vsel %vm943_vm5, %v918_v18, 0.0 }
 0x313   : > { %v968_v29 = vsel %vm943_vm5, %v918_v18, inf  ;;  %v944_v49 = vsel %vm943_vm5, %v918_v18, -inf  ;;  %v959_v30 = vsel %vm943_vm5, %v919_v17, 0.0  ;;  %v971_v50 = vsel %vm943_vm5, %v919_v17, inf  ;;  %s1326_s15 = scalar_lea.sflag [#allocation5], %s2391_s0 }
 0x314   : > { %975 = vmin.xlane.f32.xlu1 %v974_v42  ;;  %954 = vmax.xlane.f32.xlu0 %v953_v24 }
 0x318   : > { %966 = vadd.xlane.f32.xlu0 %v965_v25  ;;  %948 = vmax.xlane.f32.xlu1 %v947_v26 }
 0x31c   : > { %978 = vmin.xlane.f32.xlu0 %v977_v27  ;;  %957 = vadd.xlane.f32.xlu1 %v956_v28 }
 0x320   : > { %969 = vmin.xlane.f32.xlu1 %v968_v29  ;;  %945 = vmax.xlane.f32.xlu0 %v944_v49 }
 0x324   : > { %960 = vadd.xlane.f32.xlu0 %v959_v30 }
 0x328   : > { %972 = vmin.xlane.f32.xlu0 %v971_v50 }
 0x3dc   : > { %v1741_v31 = vpop.f32.mrb[16].mxu1 }
 0x3dd   : > { %v1153_v32 = vadd.f32 %v1741_v31, %v2284_v59  ;;  %v1144_v33 = vpop.f32.mrb[17].mxu1 }
 0x3de   : > { %v1145_v34 = vadd.f32 %v1144_v33, %v2280_v57  ;;  %v1742_v47 = vpop.f32.mrb[18].mxu1 }
 0x3df   : > { %v1156_v48 = vadd.f32 %v1742_v47, %v2286_v60  ;;  %v1147_v35 = vpop.f32.mrb[19].mxu1  ;;  %v1161_v37 = vmul.f32 0.5, %v1153_v32 }
 0x3e0   : > { %v1148_v36 = vadd.f32 %v1147_v35, %v2282_v58  ;;  %v1159_v39 = vmul.f32 0.5, %v1145_v34 }
 0x3e1   : > { %v1162_v38 = vmul.f32 0.5, %v1156_v48 }
 0x3e2   : > { %v1160_v0 = vmul.f32 0.5, %v1148_v36 }
 0x3e3   : > { %v1164_v40 = vpack.c.bf16 %v1162_v38, %v1161_v37 }
 0x3e4   : > { %v1163_v61 = vpack.c.bf16 %v1160_v0, %v1159_v39 }
 0x3e5   : > { %1850 = vtanh.bf16 %v1164_v40 }
 0x3e6   : > { %1852 = vtanh.bf16 %v1163_v61 }
 0x3f0   : > { %v1851_v62 = vpop.eup %1850 }
 0x3f1   : > { %v1853_v63 = vpop.eup %1852  ;;  %v1170_v59 = vunpack.c.h.bf16 %v1851_v62  ;;  %v1169_v43 = vunpack.c.l.bf16 %v1851_v62 }
 0x3f2   : > { %v1168_v1 = vunpack.c.h.bf16 %v1853_v63  ;;  %v1167_v57 = vunpack.c.l.bf16 %v1853_v63 }
 0x3f3   : > { %v1174_v2 = vadd.f32 1.0, %v1170_v59  ;;  %v1173_v60 = vadd.f32 1.0, %v1169_v43 }
 0x3f4   : > { %v1172_v45 = vadd.f32 1.0, %v1168_v1  ;;  %v1171_v44 = vadd.f32 1.0, %v1167_v57 }
 0x3f5   : > { %v1178_v58 = vmul.f32 0.5, %v1174_v2  ;;  %v1177_v3 = vmul.f32 0.5, %v1173_v60 }
 0x3f6   : > { %v1176_v55 = vmul.f32 0.5, %v1172_v45  ;;  %v1175_v4 = vmul.f32 0.5, %v1171_v44 }
 0x3f7   : > { %v1208_v53 = vsel %vm943_vm5, %v1178_v58, -inf  ;;  %v1665_v56 = vpack.c.bf16 %v1178_v58, %v1178_v58  ;;  %v1205_v5 = vsel %vm943_vm5, %v1177_v3, -inf  ;;  %v1664_v46 = vpack.c.bf16 %v1177_v3, %v1177_v3 }
 0x3f8   : > { %1209 = vmax.xlane.f32.xlu0 %v1208_v53  ;;  %1206 = vmax.xlane.f32.xlu1 %v1205_v5  ;;  %v1663_v54 = vpack.c.bf16 %v1176_v55, %v1176_v55  ;;  %v1662_v6 = vpack.c.bf16 %v1175_v4, %v1175_v4  ;;  %v1220_v7 = vsel %vm943_vm5, %v1178_v58, 0.0  ;;  %v1217_v8 = vsel %vm943_vm5, %v1177_v3, 0.0 }
 0x3f9   : > { %1197 = vst.msk [vmem:[%s418_s16 + $0x8] sm:$0xf] %vm938_vm6, %v1664_v46  ;;  %1198 = vst.msk [vmem:[%s418_s16 + $0xc] sm:$0xf] %vm938_vm6, %v1665_v56  ;;  %v1202_v51 = vsel %vm943_vm5, %v1176_v55, -inf  ;;  %v1199_v9 = vsel %vm943_vm5, %v1175_v4, -inf }
 0x3fa   : > { %1196 = vst.msk [vmem:[%s418_s16 + $0x4] sm:$0xf] %vm938_vm6, %v1663_v54  ;;  %1195 = vst.msk [vmem:[%s418_s16] sm:$0xf] %vm938_vm6, %v1662_v6  ;;  %v1214_v10 = vsel %vm943_vm5, %v1176_v55, 0.0  ;;  %v1211_v11 = vsel %vm943_vm5, %v1175_v4, 0.0 }
 0x3fb   : > { %v1226_v52 = vsel %vm943_vm5, %v1176_v55, inf  ;;  %v1223_v12 = vsel %vm943_vm5, %v1175_v4, inf  ;;  %v1232_v13 = vsel %vm943_vm5, %v1178_v58, inf  ;;  %v1229_v14 = vsel %vm943_vm5, %v1177_v3, inf  ;;  %s1854_s16 = scalar_lea.vmem %s2387_s23, 256 }
 0x3fc   : > { %1221 = vadd.xlane.f32.xlu0 %v1220_v7  ;;  %1218 = vadd.xlane.f32.xlu1 %v1217_v8  ;;  %p1855_p12 = scmp.ne.s32.totalorder %s2387_s23, %s1854_s16  ;;  %p1862_p2 = scmp.lt.s32.totalorder %s1860_s4, %s1854_s16 }
 0x3fe   : > { %p1856_p13 = pnand %p1855_p12, %p2104_p4  ;;  %p1863_p3 = por %p1862_p2, %p1861_p1 }
 0x400   : > { %1203 = vmax.xlane.f32.xlu0 %v1202_v51  ;;  %1200 = vmax.xlane.f32.xlu1 %v1199_v9  ;;  %p1857_p0 = pneg %p1856_p13 }
 0x402   : > { %p1864_p5 = pnand %p1863_p3, %p1857_p0 }
 0x404   : > { %1215 = vadd.xlane.f32.xlu0 %v1214_v10  ;;  %1212 = vadd.xlane.f32.xlu1 %v1211_v11 }
 0x408   : > { %1227 = vmin.xlane.f32.xlu0 %v1226_v52  ;;  %1224 = vmin.xlane.f32.xlu1 %v1223_v12 }
 0x40c   : > { %1233 = vmin.xlane.f32.xlu0 %v1232_v13  ;;  %1230 = vmin.xlane.f32.xlu1 %v1229_v14 }
 0x40d   : > { %1867 = shalt.err (!%p1864_p5)
}
 0x40e   : > { %s1868_s28 = scalar_lea.hbm %s2399_s1, 256  ;;  %s1872_s2 = scalar_lea.hbm %s2589_s8, 512 }
 0x40f   : > { %p1869_p6 = scmp.ne.s32.totalorder %s2399_s1, %s1868_s28  ;;  %p1873_p10 = scmp.lt.u32.totalorder %s2399_s1, %s2589_s8 }
 0x410   : > { %p1874_p11 = scmp.lt.u32.totalorder %s1872_s2, %s1868_s28  ;;  %p1876_p13 = scmp.lt.u32.totalorder %s1868_s28, %s2399_s1 }
 0x411   : > { %p1870_p7 = pnand %p1869_p6, %p2104_p4 }
 0x412   : > { %p1875_p12 = por %p1874_p11, %p1873_p10 }
 0x413   : > { %p1871_p9 = pneg %p1870_p7 }
 0x414   : > { %p1877_p0 = por %p1876_p13, %p1875_p12 }
 0x416   : > { %p1878_p1 = pnand %p1877_p0, %p1871_p9 }
 0x418   : > { %1881 = shalt.err (!%p1878_p1)
}
 0x419   : > { %s1998_s4 = smov 64   ;;  %s1999_s25 = smov 4  }
 0x41a   : > { %1748 = dma.vmem_to_hbm [thread:$0]  (%p2104_p4), %s2387_s23, 256, %s2399_s1, %s1326_s15, %s1998_s4, %s1998_s4, %s1999_s25  }
 0x41b   : > { %s2590_s16 = sshll.u32 %s1984_s20, 8  ;;  %s1653_s2 = sshll.u32 %s1984_s20, 4 }
 0x41c   : > { %s2433_s13 = scalar_lea.hbm %s2558_s7, %s2590_s16  ;;  %s1321_s3 = scalar_lea.sflag [#allocation3], %s2290_s14 }
 0x41d   : > { %s1882_s5 = scalar_lea.vmem %s2385_s26, 256  ;;  %s2000_s6 = smov [#allocation2]  }
 0x41e   : > { %p1883_p2 = scmp.ne.s32.totalorder %s2385_s26, %s1882_s5  ;;  %s1886_s8 = sshll.u32 %s2000_s6, 4  ;;  %s1887_s8 = int_to_ptr.vmem [resolvable:$false] %s1886_s8 }
 0x41f   : > { %s1888_s9 = scalar_lea.vmem %s1887_s8, 512  ;;  %p1889_p6 = scmp.lt.s32.totalorder %s2385_s26, %s1887_s8 }
 0x420   : > { %p1884_p3 = pnand %p1883_p2, %p2104_p4  ;;  %p1890_p7 = scmp.lt.s32.totalorder %s1888_s9, %s1882_s5 }
 0x422   : > { %p1885_p5 = pneg %p1884_p3  ;;  %p1891_p9 = por %p1890_p7, %p1889_p6 }
 0x424   : > { %p1892_p10 = pnand %p1891_p9, %p1885_p5 }
 0x426   : > { %1895 = shalt.err (!%p1892_p10)
}
 0x427   : > { %s1896_s1 = scalar_lea.hbm %s2433_s13, 256  ;;  %s1900_s6 = scalar_lea.hbm %s2558_s7, 512 }
 0x428   : > { %p1897_p11 = scmp.ne.s32.totalorder %s2433_s13, %s1896_s1  ;;  %p1901_p0 = scmp.lt.u32.totalorder %s2433_s13, %s2558_s7 }
 0x429   : > { %p1902_p1 = scmp.lt.u32.totalorder %s1900_s6, %s1896_s1  ;;  %p1904_p3 = scmp.lt.u32.totalorder %s1896_s1, %s2433_s13 }
 0x42a   : > { %p1898_p12 = pnand %p1897_p11, %p2104_p4 }
 0x42b   : > { %p1903_p2 = por %p1902_p1, %p1901_p0 }
 0x42c   : > { %p1899_p13 = pneg %p1898_p12 }
 0x42d   : > { %p1905_p5 = por %p1904_p3, %p1903_p2 }
 0x42f   : > { %p1906_p6 = pnand %p1905_p5, %p1899_p13 }
 0x431   : > { %1909 = shalt.err (!%p1906_p6)
}
 0x432   : > { %1747 = dma.vmem_to_hbm [thread:$0]  (%p2104_p4), %s2385_s26, 256, %s2433_s13, %s1321_s3, %s1998_s4, %s1998_s4, %s1999_s25  }
 0x433   : > { %s2468_s24 = scalar_lea.hbm %s2561_s10, %s1653_s2  ;;  %s2591_s1 = scalar_lea.vmem [#allocation6], %s2290_s14 }
 0x434   : > { %s1393_s23 = sshll.u32 %s2591_s1, 4  ;;  %s2001_s6 = smov [#allocation6]   ;;  %s1394_s23 = int_to_ptr.vmem [resolvable:$true] %s1393_s23 }
 0x435   : > { %s1910_s16 = scalar_lea.vmem %s1394_s23, 16  ;;  %s1914_s28 = sshll.u32 %s2001_s6, 4  ;;  %s1915_s28 = int_to_ptr.vmem [resolvable:$false] %s1914_s28 }
 0x436   : > { %p1911_p7 = scmp.ne.s32.totalorder %s1394_s23, %s1910_s16  ;;  %s1916_s8 = scalar_lea.vmem %s1915_s28, 32 }
 0x437   : > { %p1917_p11 = scmp.lt.s32.totalorder %s1394_s23, %s1915_s28  ;;  %p1918_p12 = scmp.lt.s32.totalorder %s1916_s8, %s1910_s16 }
 0x438   : > { %p1912_p9 = pnand %p1911_p7, %p2104_p4 }
 0x439   : > { %p1919_p13 = por %p1918_p12, %p1917_p11 }
 0x43a   : > { %p1913_p10 = pneg %p1912_p9 }
 0x43c   : > { %p1920_p0 = pnand %p1919_p13, %p1913_p10 }
 0x43e   : > { %1923 = shalt.err (!%p1920_p0)
}
 0x43f   : > { %s1924_s20 = scalar_lea.hbm %s2468_s24, 16  ;;  %s1928_s4 = scalar_lea.hbm %s2561_s10, 32 }
 0x440   : > { %p1925_p1 = scmp.ne.s32.totalorder %s2468_s24, %s1924_s20  ;;  %p1929_p5 = scmp.lt.u32.totalorder %s2468_s24, %s2561_s10 }
 0x441   : > { %p1930_p6 = scmp.lt.u32.totalorder %s1928_s4, %s1924_s20  ;;  %p1932_p9 = scmp.lt.u32.totalorder %s1924_s20, %s2468_s24 }
 0x442   : > { %p1926_p2 = pnand %p1925_p1, %p2104_p4 }
 0x443   : > { %p1931_p7 = por %p1930_p6, %p1929_p5 }
 0x444   : > { %p1927_p3 = pneg %p1926_p2 }
 0x445   : > { %p1933_p10 = por %p1932_p9, %p1931_p7 }
 0x447   : > { %p1934_p11 = pnand %p1933_p10, %p1927_p3 }
 0x449   : > { %1937 = shalt.err (!%p1934_p11)
}
 0x44a   : > { %1749 = dma.vmem_to_hbm [thread:$0]  (%p2104_p4), %s1394_s23, 16, %s2468_s24, %s1326_s15   ;;  %v952_v15 = vpop.xlane.xlu0 %951  ;;  %v964_v17 = vpop.xlane.xlu1 %963  ;;  %vm1235_vm7 = vcmask 7168   ;;  %vm1240_vm8 = vcmask 15360   ;;  %vm1245_vm9 = vcmask 23552   ;;  %vm1255_vm10 = vcmask 39936  }
 0x44b   : > { %s1657_s27 = sshll.u32 %s2126_s12, 5  ;;  %vm1250_vm11 = vcmask 31744   ;;  %vm1260_vm12 = vcmask 48128   ;;  %v1238_v35 = vsel %vm1235_vm7, %v952_v15, %v964_v17  ;;  %vm1265_vm13 = vcmask 56320  }
 0x44c   : > { %s460_s15 = scalar_lea.vmem %s2562_s11, %s1657_s27  ;;  %vm1274_vm14 = vcmask 64512  }
 0x44e   : > { %v955_v16 = vpop.xlane.xlu0 %954  ;;  %v976_v19 = vpop.xlane.xlu1 %975 }
 0x44f   : > { %v1243_v62 = vsel %vm1240_vm8, %v1238_v35, %v976_v19 }
 0x452   : > { %v967_v18 = vpop.xlane.xlu0 %966  ;;  %v949_v21 = vpop.xlane.xlu1 %948 }
 0x453   : > { %v1239_v0 = vsel %vm1235_vm7, %v955_v16, %v967_v18 }
 0x456   : > { %v979_v20 = vpop.xlane.xlu0 %978  ;;  %v958_v23 = vpop.xlane.xlu1 %957 }
 0x457   : > { %v1244_v63 = vsel %vm1240_vm8, %v1239_v0, %v979_v20 }
 0x45a   : > { %v946_v22 = vpop.xlane.xlu0 %945  ;;  %v970_v42 = vpop.xlane.xlu1 %969 }
 0x45b   : > { %v1236_v30 = vsel %vm1235_vm7, %v946_v22, %v958_v23 }
 0x45c   : > { %v1241_v34 = vsel %vm1240_vm8, %v1236_v30, %v970_v42 }
 0x45e   : > { %v961_v41 = vpop.xlane.xlu0 %960 }
 0x45f   : > { %v1237_v32 = vsel %vm1235_vm7, %v949_v21, %v961_v41 }
 0x462   : > { %v973_v24 = vpop.xlane.xlu0 %972 }
 0x463   : > { %v1242_v33 = vsel %vm1240_vm8, %v1237_v32, %v973_v24 }
 0x485   : > { %v1210_v25 = vpop.xlane.xlu0 %1209  ;;  %v1207_v26 = vpop.xlane.xlu1 %1206 }
 0x486   : > { %v1249_v1 = vsel %vm1245_vm9, %v1244_v63, %v1210_v25  ;;  %v1248_v57 = vsel %vm1245_vm9, %v1243_v62, %v1207_v26 }
 0x489   : > { %v1222_v27 = vpop.xlane.xlu0 %1221  ;;  %v1219_v28 = vpop.xlane.xlu1 %1218 }
 0x48a   : > { %v1254_v45 = vsel %vm1250_vm11, %v1249_v1, %v1222_v27  ;;  %v1253_v44 = vsel %vm1250_vm11, %v1248_v57, %v1219_v28 }
 0x48d   : > { %v1204_v29 = vpop.xlane.xlu0 %1203  ;;  %v1201_v49 = vpop.xlane.xlu1 %1200 }
 0x48e   : > { %v1247_v47 = vsel %vm1245_vm9, %v1242_v33, %v1204_v29  ;;  %v1246_v48 = vsel %vm1245_vm9, %v1241_v34, %v1201_v49 }
 0x491   : > { %v1216_v50 = vpop.xlane.xlu0 %1215  ;;  %v1213_v31 = vpop.xlane.xlu1 %1212 }
 0x492   : > { %v1252_v36 = vsel %vm1250_vm11, %v1247_v47, %v1216_v50  ;;  %v1251_v37 = vsel %vm1250_vm11, %v1246_v48, %v1213_v31 }
 0x495   : > { %v1228_v38 = vpop.xlane.xlu0 %1227  ;;  %v1225_v39 = vpop.xlane.xlu1 %1224 }
 0x496   : > { %v1257_v40 = vsel %vm1255_vm10, %v1252_v36, %v1228_v38  ;;  %v1256_v61 = vsel %vm1255_vm10, %v1251_v37, %v1225_v39 }
 0x497   : > { %v1262_v59 = vsel %vm1260_vm12, %v1257_v40, 0.0  ;;  %v1261_v43 = vsel %vm1260_vm12, %v1256_v61, 0.0 }
 0x498   : > { %v1267_v2 = vsel %vm1265_vm13, %v1262_v59, 0.0  ;;  %v1266_v60 = vsel %vm1265_vm13, %v1261_v43, 0.0 }
 0x499   : > { %1276 = vst.msk [vmem:[%s460_s15 + $0x8] sm:$0xff] %vm1274_vm14, %v1267_v2  ;;  %1275 = vst.msk [vmem:[%s460_s15] sm:$0xff] %vm1274_vm14, %v1266_v60  ;;  %v1234_v58 = vpop.xlane.xlu0 %1233  ;;  %v1231_v3 = vpop.xlane.xlu1 %1230 }
 0x49a   : > { %v1259_v55 = vsel %vm1255_vm10, %v1254_v45, %v1234_v58  ;;  %v1258_v4 = vsel %vm1255_vm10, %v1253_v44, %v1231_v3 }
 0x49b   : > { %v1264_v53 = vsel %vm1260_vm12, %v1259_v55, 0.0  ;;  %v1263_v56 = vsel %vm1260_vm12, %v1258_v4, 0.0 }
 0x49c   : > { %v1269_v5 = vsel %vm1265_vm13, %v1264_v53, 0.0  ;;  %v1268_v46 = vsel %vm1265_vm13, %v1263_v56, 0.0 }
 0x49d   : > { %1278 = vst.msk [vmem:[%s460_s15 + $0x18] sm:$0xff] %vm1274_vm14, %v1269_v5  ;;  %1277 = vst.msk [vmem:[%s460_s15 + $0x10] sm:$0xff] %vm1274_vm14, %v1268_v46 }
 0x49e PF: > { %p1763_p4 = scmp.ge.s32.totalorder %s1992_s22, 2  ;;  %s1408_s2 = sand.u32 1, %s1972_s17  }
 0x49f   : > { %s1409_s3 = scalar_lea.sflag [#allocation3], %s1408_s2 }
 0x4a0   : > { %p1754_p12 = pnand %p1763_p4, %p2113_p8 }
 0x4a2   : > { %1963 = dma.done.wait (!%p1754_p12), %s1409_s3, 256  }
 0x4a3   : > { %1965 = vsyncadd (!%p1754_p12), %s1409_s3, 4294967040  ;;  %s2592_s5 = sadd.s32 4294967294, %s1992_s22  }
 0x4a4   : > { %s1417_s9 = sand.u32 1, %s2592_s5  }
 0x4a5   : > { %s1418_s24 = scalar_lea.sflag [#allocation5], %s1417_s9 }
 0x4a6   : > { %1967 = dma.done.wait (!%p1754_p12), %s1418_s24, 272  }
 0x4a7   : > { %1969 = vsyncadd (!%p1754_p12), %s1418_s24, 4294967024  ;;  %s28_s22 = sadd.s32 1, %s1992_s22   ;;  %s2593_s1 = sld [smem:[#allocation9_spill]] }
 0x4a8   : > { %p25_p13 = scmp.ge.s32.totalorder %s28_s22, 4   ;;  %s2594_s17 = smov %s1976_s18 }
 0x4a9   : > { %s2595_s18 = smov %s1980_s19  ;;  %s2596_s19 = smov %s2119_s30 }
 0x4aa   : > { %s2597_s20 = smov %s1988_s21  ;;  %27 = sbr.rel (!%p25_p13) target bundleno = 16 (0x10), region = 151 }
 0x4ad   : > { %s2598_s21 = smov %s2593_s1 }
 0x4b1   :  { %1449 = vsyncpa [#allocation3], 1 }
 0x4b2   :  { %1451 = vsyncpa [#allocation3 + $0x1], 1 }
 0x4b3   :  { %1452 = vsyncpa [#allocation5], 1 }
 0x4b4   :  { %1454 = vsyncpa [#allocation5 + $0x1], 1 }

</bundles_post_ra>
